<compile_context>
chip_gen: v6e
topology: v6e:2x2x1
jax: 0.10.0
libtpu: 0.0.40
codegen_flags: <defaults>
</compile_context>

<pallas_src>
import functools

import jax
import jax.numpy as jnp
import numpy as np
from jax.experimental import pallas as pl
from jax.experimental.pallas import tpu as pltpu


def _is_pow2(n):
    return n > 0 and (n & (n - 1)) == 0


def _tap_masks(hrow, wcol, H, W):
    """Boundary masks for the 8 non-center 3x3 taps (built once, reused)."""
    top = hrow >= 1          # valid when dy == -1
    bot = hrow <= H - 2      # valid when dy == +1
    left = wcol >= 1         # valid when dx == -1
    right = wcol <= W - 2    # valid when dx == +1
    masks = {}
    for dy in (-1, 0, 1):
        for dx in (-1, 0, 1):
            m = None
            if dy == -1:
                m = top
            elif dy == 1:
                m = bot
            if dx == -1:
                m = left if m is None else jnp.logical_and(m, left)
            elif dx == 1:
                m = right if m is None else jnp.logical_and(m, right)
            if m is not None:
                masks[(dy, dx)] = m
    return masks


def _fill_im2col(im_ref, x, masks, W, C):
    """Write the 9 shifted+masked copies of x (C, L) into im_ref (9*C, L).

    Row layout is tap-major / channel-minor: row = (ky*3 + kx)*C + c, matching
    the host-side weight flattening.  The flat roll wraps exactly at positions
    that the boundary masks zero out, so roll + mask == zero padding (this
    stays true with batches concatenated along the lane axis).
    """
    for ky in range(3):
        for kx in range(3):
            dy, dx = ky - 1, kx - 1
            off = dy * W + dx
            # jnp.roll lowers to lane rotates/concats on the XLU; a 2-D
            # (row-sublane / col-lane) layout is the follow-up for big images.
            xs = x if off == 0 else jnp.roll(x, -off, axis=1)
            m = masks.get((dy, dx))
            if m is not None:
                xs = jnp.where(m, xs, 0)
            t = ky * 3 + kx
            im_ref[t * C:(t + 1) * C, :] = xs


def _features_body(H, W, mxu_dtype, hrow, wcol,
                   x_ref, w1_ref, b1_ref, w2_ref, b2_ref,
                   wd_ref, bd_ref, wf_ref, bf_ref,
                   out_ref, im1_ref, im2_ref):
    C_in = x_ref.shape[0]
    C_mid = w1_ref.shape[0]

    x = x_ref[...].astype(jnp.float32)               # (C_in, L)
    x_mx = x.astype(mxu_dtype)                        # no-op when f32

    masks = _tap_masks(hrow, wcol, H, W)              # built once, used twice

    # conv1: 3x3, Cin -> 2*Cin, one im2col matmul (K = 9*Cin) + ReLU
    _fill_im2col(im1_ref, x_mx, masks, W, C_in)
    y = jnp.dot(w1_ref[...], im1_ref[...],
                preferred_element_type=jnp.float32) + b1_ref[...]
    y = jnp.maximum(y, 0.0)

    # conv2: 3x3, 2*Cin -> Cout, one im2col matmul (K = 9*2*Cin)
    _fill_im2col(im2_ref, y.astype(mxu_dtype), masks, W, C_mid)
    y = jnp.dot(w2_ref[...], im2_ref[...],
                preferred_element_type=jnp.float32) + b2_ref[...]

    # down bottleneck (1x1, Cin -> Cout) on the original input, residual+ReLU
    hx = jnp.dot(wd_ref[...], x_mx,
                 preferred_element_type=jnp.float32) + bd_ref[...]
    y = jnp.maximum(hx + y, 0.0)

    # final 1x1 conv (Cout -> Cout)
    y = jnp.dot(wf_ref[...], y.astype(mxu_dtype),
                preferred_element_type=jnp.float32) + bf_ref[...]
    out_ref[...] = y.astype(out_ref.dtype)


def _kernel_pow2(H, W, mxu_dtype,
                 x_ref, w1_ref, b1_ref, w2_ref, b2_ref,
                 wd_ref, bd_ref, wf_ref, bf_ref,
                 out_ref, im1_ref, im2_ref):
    # In-kernel per-pixel (row, col) from a 2-D iota; pure shifts/ands since
    # H, W are powers of two.  Batches are concatenated along the lane axis,
    # each occupying H*W consecutive lanes, so the low bits are col/row.
    L = x_ref.shape[-1]
    idx = jax.lax.broadcasted_iota(jnp.int32, (1, L), 1)
    w_bits = W.bit_length() - 1
    wcol = jnp.bitwise_and(idx, W - 1)
    hrow = jnp.bitwise_and(jnp.right_shift(idx, w_bits), H - 1)
    _features_body(H, W, mxu_dtype, hrow, wcol,
                   x_ref, w1_ref, b1_ref, w2_ref, b2_ref,
                   wd_ref, bd_ref, wf_ref, bf_ref,
                   out_ref, im1_ref, im2_ref)


def _kernel_rc(H, W, mxu_dtype,
               rc_ref, x_ref, w1_ref, b1_ref, w2_ref, b2_ref,
               wd_ref, bd_ref, wf_ref, bf_ref,
               out_ref, im1_ref, im2_ref):
    hrow = rc_ref[0:1, :]
    wcol = rc_ref[1:2, :]
    _features_body(H, W, mxu_dtype, hrow, wcol,
                   x_ref, w1_ref, b1_ref, w2_ref, b2_ref,
                   wd_ref, bd_ref, wf_ref, bf_ref,
                   out_ref, im1_ref, im2_ref)


def features_processing_with_last_conv(x, params, *,
                                        mxu_dtype=jnp.float32,
                                        lane_target=2048):
    """Pallas implementation of FeaturesProcessingWithLastConv.forward (NCHW).

    Set mxu_dtype=jnp.bfloat16 at large channel counts on v5e/v6e for native
    MXU rate (loosen correctness tolerance to ~1e-2 in that case).
    """
    B, C_in, H, W = x.shape
    w1, b1 = params["conv1_w"], params["conv1_b"]   # (2*Cin, Cin, 3, 3), (2*Cin,)
    w2, b2 = params["conv2_w"], params["conv2_b"]   # (Cout, 2*Cin, 3, 3), (Cout,)
    wd, bd = params["down_w"], params["down_b"]     # (Cout, Cin, 1, 1), (Cout,)
    wf, bf = params["final_w"], params["final_b"]   # (Cout, Cout, 1, 1), (Cout,)
    C_mid = w1.shape[0]
    C_out = w2.shape[0]
    assert C_mid == 2 * C_in
    HW = H * W

    # ---- batch/lane blocking: lane axis carries Bt*HW pixels per grid step.
    if HW % 128 != 0:
        Bt = B                                   # lane block must be the full axis
    else:
        Bt = 1
        for d in range(1, B + 1):
            if B % d == 0 and d * HW <= max(lane_target, HW):
                Bt = d
    L = Bt * HW
    n_steps = B // Bt

    # x: (B, C_in, H, W) -> (C_in, B*HW); cheap one-off XLA transpose.
    x_cl = jnp.transpose(x.reshape(B, C_in, HW), (1, 0, 2)).reshape(C_in, B * HW)

    # im2col-flattened weights: column = (ky*3 + kx)*C_in + c (tap-major).
    w1_f = jnp.transpose(w1, (0, 2, 3, 1)).reshape(C_mid, 9 * C_in).astype(mxu_dtype)
    w2_f = jnp.transpose(w2, (0, 2, 3, 1)).reshape(C_out, 9 * C_mid).astype(mxu_dtype)
    wd_m = wd.reshape(C_out, C_in).astype(mxu_dtype)
    wf_m = wf.reshape(C_out, C_out).astype(mxu_dtype)
    # Biases stay f32 (added to f32 accumulators).
    b1_c = b1.reshape(C_mid, 1).astype(jnp.float32)
    b2_c = b2.reshape(C_out, 1).astype(jnp.float32)
    bd_c = bd.reshape(C_out, 1).astype(jnp.float32)
    bf_c = bf.reshape(C_out, 1).astype(jnp.float32)

    def full_spec(shape):
        zeros = (0,) * len(shape)
        return pl.BlockSpec(shape, lambda b, _z=zeros: _z)

    use_iota = _is_pow2(H) and _is_pow2(W)
    if use_iota:
        kernel = functools.partial(_kernel_pow2, H, W, mxu_dtype)
        extra_inputs = ()
        extra_specs = []
    else:
        # Fallback: host-built per-pixel (row, col), tiled across the batch lanes.
        rows = jnp.repeat(jnp.arange(H, dtype=jnp.int32), W)
        cols = jnp.tile(jnp.arange(W, dtype=jnp.int32), H)
        rc = jnp.tile(jnp.stack([rows, cols], axis=0), (1, B))   # (2, B*HW)
        kernel = functools.partial(_kernel_rc, H, W, mxu_dtype)
        extra_inputs = (rc,)
        extra_specs = [pl.BlockSpec((2, L), lambda b: (0, b))]

    in_specs = extra_specs + [
        pl.BlockSpec((C_in, L), lambda b: (0, b)),   # x (per batch-block)
        full_spec((C_mid, 9 * C_in)),                # conv1 weights (im2col)
        full_spec((C_mid, 1)),                       # conv1 bias
        full_spec((C_out, 9 * C_mid)),               # conv2 weights (im2col)
        full_spec((C_out, 1)),                       # conv2 bias
        full_spec((C_out, C_in)),                    # down_bneck weight
        full_spec((C_out, 1)),                       # down_bneck bias
        full_spec((C_out, C_out)),                   # final conv weight
        full_spec((C_out, 1)),                       # final conv bias
    ]

    # Per-step working set (double-buffered x/out tiles + im2col scratch +
    # weights) is well under every generation's default scoped VMEM at these
    # sizes; at large H*W size it against v7x's 64 MiB and set vmem_limit_bytes.
    out_flat = pl.pallas_call(
        kernel,
        out_shape=jax.ShapeDtypeStruct((C_out, B * HW), x.dtype),
        grid=(n_steps,),
        in_specs=in_specs,
        out_specs=pl.BlockSpec((C_out, L), lambda b: (0, b)),
        scratch_shapes=[
            pltpu.VMEM((9 * C_in, L), mxu_dtype),    # im2col buffer for conv1
            pltpu.VMEM((9 * C_mid, L), mxu_dtype),   # im2col buffer for conv2
        ],
        compiler_params=pltpu.CompilerParams(
            dimension_semantics=("parallel",),
        ),
    )(*extra_inputs, x_cl, w1_f, b1_c, w2_f, b2_c, wd_m, bd_c, wf_m, bf_c)

    return (out_flat.reshape(C_out, B, HW)
            .transpose(1, 0, 2)
            .reshape(B, C_out, H, W))


# ----------------------------- pure-JAX reference -----------------------------

def _conv2d_ref(x, w, b, padding):
    y = jax.lax.conv_general_dilated(
        x, w, window_strides=(1, 1), padding=padding,
        dimension_numbers=("NCHW", "OIHW", "NCHW"),
        precision=jax.lax.Precision.HIGHEST)
    return y + b[None, :, None, None]


def features_processing_ref(x, params):
    y = _conv2d_ref(x, params["conv1_w"], params["conv1_b"], "SAME")
    y = jnp.maximum(y, 0.0)
    y = _conv2d_ref(y, params["conv2_w"], params["conv2_b"], "SAME")
    hx = _conv2d_ref(x, params["down_w"], params["down_b"], "VALID")
    y = jnp.maximum(hx + y, 0.0)
    y = _conv2d_ref(y, params["final_w"], params["final_b"], "VALID")
    return y


if __name__ == "__main__":
    B, in_ch, out_ch, H, W = 2, 4, 8, 16, 16
    mid_ch = 2 * in_ch

    key = jax.random.PRNGKey(0)
    ks = jax.random.split(key, 9)
    scale = 0.1
    params = {
        "conv1_w": scale * jax.random.normal(ks[0], (mid_ch, in_ch, 3, 3), jnp.float32),
        "conv1_b": scale * jax.random.normal(ks[1], (mid_ch,), jnp.float32),
        "conv2_w": scale * jax.random.normal(ks[2], (out_ch, mid_ch, 3, 3), jnp.float32),
        "conv2_b": scale * jax.random.normal(ks[3], (out_ch,), jnp.float32),
        "down_w": scale * jax.random.normal(ks[4], (out_ch, in_ch, 1, 1), jnp.float32),
        "down_b": scale * jax.random.normal(ks[5], (out_ch,), jnp.float32),
        "final_w": scale * jax.random.normal(ks[6], (out_ch, out_ch, 1, 1), jnp.float32),
        "final_b": scale * jax.random.normal(ks[7], (out_ch,), jnp.float32),
    }
    x = jax.random.normal(ks[8], (B, in_ch, H, W), jnp.float32)

    out = jax.block_until_ready(features_processing_with_last_conv(x, params))
    ref = jax.block_until_ready(features_processing_ref(x, params))

    assert out.shape == (B, out_ch, H, W), out.shape
    assert out.dtype == x.dtype
    np.testing.assert_allclose(np.asarray(out), np.asarray(ref),
                               rtol=1e-4, atol=1e-4)
    print("KERNEL_OK")
</pallas_src>

<mosaic_0001>
module attributes {stable_mosaic.version = 11 : i64} {
  func.func @_kernel_pow2(%arg0: i32, %arg1: memref<4x512xf32, #tpu.memory_space<vmem>>, %arg2: memref<8x36xf32, #tpu.memory_space<vmem>>, %arg3: memref<8x1xf32, #tpu.memory_space<vmem>>, %arg4: memref<8x72xf32, #tpu.memory_space<vmem>>, %arg5: memref<8x1xf32, #tpu.memory_space<vmem>>, %arg6: memref<8x4xf32, #tpu.memory_space<vmem>>, %arg7: memref<8x1xf32, #tpu.memory_space<vmem>>, %arg8: memref<8x8xf32, #tpu.memory_space<vmem>>, %arg9: memref<8x1xf32, #tpu.memory_space<vmem>>, %arg10: memref<8x512xf32, #tpu.memory_space<vmem>>, %arg11: memref<36x512xf32, #tpu.memory_space<vmem>>, %arg12: memref<72x512xf32, #tpu.memory_space<vmem>>) attributes {dimension_semantics = [#tpu.dimension_semantics<parallel>], iteration_bounds = array<i64: 1>, scalar_prefetch = 0 : i64, scratch_operands = 2 : i64, tpu.core_type = #tpu.core_type<tc>, window_params = [{transform_indices = @transform_0, window_bounds = array<i64: 4, 512>}, {pipeline_mode = #tpu.pipeline_mode<synchronous>, transform_indices = @transform_1, window_bounds = array<i64: 8, 36>}, {pipeline_mode = #tpu.pipeline_mode<synchronous>, transform_indices = @transform_2, window_bounds = array<i64: 8, 1>}, {pipeline_mode = #tpu.pipeline_mode<synchronous>, transform_indices = @transform_3, window_bounds = array<i64: 8, 72>}, {pipeline_mode = #tpu.pipeline_mode<synchronous>, transform_indices = @transform_4, window_bounds = array<i64: 8, 1>}, {pipeline_mode = #tpu.pipeline_mode<synchronous>, transform_indices = @transform_5, window_bounds = array<i64: 8, 4>}, {pipeline_mode = #tpu.pipeline_mode<synchronous>, transform_indices = @transform_6, window_bounds = array<i64: 8, 1>}, {pipeline_mode = #tpu.pipeline_mode<synchronous>, transform_indices = @transform_7, window_bounds = array<i64: 8, 8>}, {pipeline_mode = #tpu.pipeline_mode<synchronous>, transform_indices = @transform_8, window_bounds = array<i64: 8, 1>}, {transform_indices = @transform_9, window_bounds = array<i64: 8, 512>}]} {
    %0 = tpu.iota {dimensions = array<i32: 1>} : vector<1x512xi32>
    %c15_i32 = arith.constant 15 : i32
    %1 = vector.broadcast %c15_i32 : i32 to vector<1x512xi32>
    %2 = arith.andi %0, %1 : vector<1x512xi32>
    %c4_i32 = arith.constant 4 : i32
    %3 = vector.broadcast %c4_i32 : i32 to vector<1x512xi32>
    %4 = arith.shrsi %0, %3 : vector<1x512xi32>
    %c15_i32_0 = arith.constant 15 : i32
    %5 = vector.broadcast %c15_i32_0 : i32 to vector<1x512xi32>
    %6 = arith.andi %4, %5 : vector<1x512xi32>
    %c0 = arith.constant 0 : index
    %c0_1 = arith.constant 0 : index
    %7 = vector.load %arg1[%c0, %c0_1] : memref<4x512xf32, #tpu.memory_space<vmem>>, vector<4x512xf32>
    %c1_i32 = arith.constant 1 : i32
    %8 = vector.broadcast %c1_i32 : i32 to vector<1x512xi32>
    %9 = arith.cmpi sge, %6, %8 : vector<1x512xi32>
    %c14_i32 = arith.constant 14 : i32
    %10 = vector.broadcast %c14_i32 : i32 to vector<1x512xi32>
    %11 = arith.cmpi sle, %6, %10 : vector<1x512xi32>
    %c1_i32_2 = arith.constant 1 : i32
    %12 = vector.broadcast %c1_i32_2 : i32 to vector<1x512xi32>
    %13 = arith.cmpi sge, %2, %12 : vector<1x512xi32>
    %c14_i32_3 = arith.constant 14 : i32
    %14 = vector.broadcast %c14_i32_3 : i32 to vector<1x512xi32>
    %15 = arith.cmpi sle, %2, %14 : vector<1x512xi32>
    %16 = arith.andi %9, %13 : vector<1x512xi1>
    %17 = arith.andi %9, %15 : vector<1x512xi1>
    %18 = arith.andi %11, %13 : vector<1x512xi1>
    %19 = arith.andi %11, %15 : vector<1x512xi1>
    %20 = vector.extract_strided_slice %7 {offsets = [0, 495], sizes = [4, 17], strides = [1, 1]} : vector<4x512xf32> to vector<4x17xf32>
    %21 = vector.extract_strided_slice %7 {offsets = [0, 0], sizes = [4, 495], strides = [1, 1]} : vector<4x512xf32> to vector<4x495xf32>
    %22 = tpu.concatenate %20, %21 in 1 : vector<4x17xf32>, vector<4x495xf32> -> vector<4x512xf32>
    %c0_i32 = arith.constant 0 : i32
    %23 = arith.sitofp %c0_i32 : i32 to f32
    %24 = vector.shape_cast %16 : vector<1x512xi1> to vector<1x512xi1>
    %25 = vector.broadcast %24 : vector<1x512xi1> to vector<4x512xi1>
    %26 = vector.broadcast %23 : f32 to vector<4x512xf32>
    %27 = arith.select %25, %22, %26 : vector<4x512xi1>, vector<4x512xf32>
    %c0_4 = arith.constant 0 : index
    %c0_5 = arith.constant 0 : index
    %28 = vector.load %arg11[%c0_4, %c0_5] : memref<36x512xf32, #tpu.memory_space<vmem>>, vector<4x512xf32>
    tpu.vector_store %arg11[%c0_4, %c0_5], %27 {strides = array<i32>} : memref<36x512xf32, #tpu.memory_space<vmem>>, vector<4x512xf32>,
    %29 = vector.extract_strided_slice %7 {offsets = [0, 496], sizes = [4, 16], strides = [1, 1]} : vector<4x512xf32> to vector<4x16xf32>
    %30 = vector.extract_strided_slice %7 {offsets = [0, 0], sizes = [4, 496], strides = [1, 1]} : vector<4x512xf32> to vector<4x496xf32>
    %31 = tpu.concatenate %29, %30 in 1 : vector<4x16xf32>, vector<4x496xf32> -> vector<4x512xf32>
    %c0_i32_6 = arith.constant 0 : i32
    %32 = arith.sitofp %c0_i32_6 : i32 to f32
    %33 = vector.shape_cast %9 : vector<1x512xi1> to vector<1x512xi1>
    %34 = vector.broadcast %33 : vector<1x512xi1> to vector<4x512xi1>
    %35 = vector.broadcast %32 : f32 to vector<4x512xf32>
    %36 = arith.select %34, %31, %35 : vector<4x512xi1>, vector<4x512xf32>
    %c4 = arith.constant 4 : index
    %c0_7 = arith.constant 0 : index
    %37 = vector.load %arg11[%c4, %c0_7] : memref<36x512xf32, #tpu.memory_space<vmem>>, vector<4x512xf32>
    tpu.vector_store %arg11[%c4, %c0_7], %36 {strides = array<i32>} : memref<36x512xf32, #tpu.memory_space<vmem>>, vector<4x512xf32>,
    %38 = vector.extract_strided_slice %7 {offsets = [0, 497], sizes = [4, 15], strides = [1, 1]} : vector<4x512xf32> to vector<4x15xf32>
    %39 = vector.extract_strided_slice %7 {offsets = [0, 0], sizes = [4, 497], strides = [1, 1]} : vector<4x512xf32> to vector<4x497xf32>
    %40 = tpu.concatenate %38, %39 in 1 : vector<4x15xf32>, vector<4x497xf32> -> vector<4x512xf32>
    %c0_i32_8 = arith.constant 0 : i32
    %41 = arith.sitofp %c0_i32_8 : i32 to f32
    %42 = vector.shape_cast %17 : vector<1x512xi1> to vector<1x512xi1>
    %43 = vector.broadcast %42 : vector<1x512xi1> to vector<4x512xi1>
    %44 = vector.broadcast %41 : f32 to vector<4x512xf32>
    %45 = arith.select %43, %40, %44 : vector<4x512xi1>, vector<4x512xf32>
    %c8 = arith.constant 8 : index
    %c0_9 = arith.constant 0 : index
    %46 = vector.load %arg11[%c8, %c0_9] : memref<36x512xf32, #tpu.memory_space<vmem>>, vector<4x512xf32>
    tpu.vector_store %arg11[%c8, %c0_9], %45 {strides = array<i32>} : memref<36x512xf32, #tpu.memory_space<vmem>>, vector<4x512xf32>,
    %47 = vector.extract_strided_slice %7 {offsets = [0, 511], sizes = [4, 1], strides = [1, 1]} : vector<4x512xf32> to vector<4x1xf32>
    %48 = vector.extract_strided_slice %7 {offsets = [0, 0], sizes = [4, 511], strides = [1, 1]} : vector<4x512xf32> to vector<4x511xf32>
    %49 = tpu.concatenate %47, %48 in 1 : vector<4x1xf32>, vector<4x511xf32> -> vector<4x512xf32>
    %c0_i32_10 = arith.constant 0 : i32
    %50 = arith.sitofp %c0_i32_10 : i32 to f32
    %51 = vector.shape_cast %13 : vector<1x512xi1> to vector<1x512xi1>
    %52 = vector.broadcast %51 : vector<1x512xi1> to vector<4x512xi1>
    %53 = vector.broadcast %50 : f32 to vector<4x512xf32>
    %54 = arith.select %52, %49, %53 : vector<4x512xi1>, vector<4x512xf32>
    %c12 = arith.constant 12 : index
    %c0_11 = arith.constant 0 : index
    %55 = vector.load %arg11[%c12, %c0_11] : memref<36x512xf32, #tpu.memory_space<vmem>>, vector<4x512xf32>
    tpu.vector_store %arg11[%c12, %c0_11], %54 {strides = array<i32>} : memref<36x512xf32, #tpu.memory_space<vmem>>, vector<4x512xf32>,
    %c16 = arith.constant 16 : index
    %c0_12 = arith.constant 0 : index
    %56 = vector.load %arg11[%c16, %c0_12] : memref<36x512xf32, #tpu.memory_space<vmem>>, vector<4x512xf32>
    tpu.vector_store %arg11[%c16, %c0_12], %7 {strides = array<i32>} : memref<36x512xf32, #tpu.memory_space<vmem>>, vector<4x512xf32>,
    %57 = vector.extract_strided_slice %7 {offsets = [0, 1], sizes = [4, 511], strides = [1, 1]} : vector<4x512xf32> to vector<4x511xf32>
    %58 = vector.extract_strided_slice %7 {offsets = [0, 0], sizes = [4, 1], strides = [1, 1]} : vector<4x512xf32> to vector<4x1xf32>
    %59 = tpu.concatenate %57, %58 in 1 : vector<4x511xf32>, vector<4x1xf32> -> vector<4x512xf32>
    %c0_i32_13 = arith.constant 0 : i32
    %60 = arith.sitofp %c0_i32_13 : i32 to f32
    %61 = vector.shape_cast %15 : vector<1x512xi1> to vector<1x512xi1>
    %62 = vector.broadcast %61 : vector<1x512xi1> to vector<4x512xi1>
    %63 = vector.broadcast %60 : f32 to vector<4x512xf32>
    %64 = arith.select %62, %59, %63 : vector<4x512xi1>, vector<4x512xf32>
    %c20 = arith.constant 20 : index
    %c0_14 = arith.constant 0 : index
    %65 = vector.load %arg11[%c20, %c0_14] : memref<36x512xf32, #tpu.memory_space<vmem>>, vector<4x512xf32>
    tpu.vector_store %arg11[%c20, %c0_14], %64 {strides = array<i32>} : memref<36x512xf32, #tpu.memory_space<vmem>>, vector<4x512xf32>,
    %66 = vector.extract_strided_slice %7 {offsets = [0, 15], sizes = [4, 497], strides = [1, 1]} : vector<4x512xf32> to vector<4x497xf32>
    %67 = vector.extract_strided_slice %7 {offsets = [0, 0], sizes = [4, 15], strides = [1, 1]} : vector<4x512xf32> to vector<4x15xf32>
    %68 = tpu.concatenate %66, %67 in 1 : vector<4x497xf32>, vector<4x15xf32> -> vector<4x512xf32>
    %c0_i32_15 = arith.constant 0 : i32
    %69 = arith.sitofp %c0_i32_15 : i32 to f32
    %70 = vector.shape_cast %18 : vector<1x512xi1> to vector<1x512xi1>
    %71 = vector.broadcast %70 : vector<1x512xi1> to vector<4x512xi1>
    %72 = vector.broadcast %69 : f32 to vector<4x512xf32>
    %73 = arith.select %71, %68, %72 : vector<4x512xi1>, vector<4x512xf32>
    %c24 = arith.constant 24 : index
    %c0_16 = arith.constant 0 : index
    %74 = vector.load %arg11[%c24, %c0_16] : memref<36x512xf32, #tpu.memory_space<vmem>>, vector<4x512xf32>
    tpu.vector_store %arg11[%c24, %c0_16], %73 {strides = array<i32>} : memref<36x512xf32, #tpu.memory_space<vmem>>, vector<4x512xf32>,
    %75 = vector.extract_strided_slice %7 {offsets = [0, 16], sizes = [4, 496], strides = [1, 1]} : vector<4x512xf32> to vector<4x496xf32>
    %76 = vector.extract_strided_slice %7 {offsets = [0, 0], sizes = [4, 16], strides = [1, 1]} : vector<4x512xf32> to vector<4x16xf32>
    %77 = tpu.concatenate %75, %76 in 1 : vector<4x496xf32>, vector<4x16xf32> -> vector<4x512xf32>
    %c0_i32_17 = arith.constant 0 : i32
    %78 = arith.sitofp %c0_i32_17 : i32 to f32
    %79 = vector.shape_cast %11 : vector<1x512xi1> to vector<1x512xi1>
    %80 = vector.broadcast %79 : vector<1x512xi1> to vector<4x512xi1>
    %81 = vector.broadcast %78 : f32 to vector<4x512xf32>
    %82 = arith.select %80, %77, %81 : vector<4x512xi1>, vector<4x512xf32>
    %c28 = arith.constant 28 : index
    %c0_18 = arith.constant 0 : index
    %83 = vector.load %arg11[%c28, %c0_18] : memref<36x512xf32, #tpu.memory_space<vmem>>, vector<4x512xf32>
    tpu.vector_store %arg11[%c28, %c0_18], %82 {strides = array<i32>} : memref<36x512xf32, #tpu.memory_space<vmem>>, vector<4x512xf32>,
    %84 = vector.extract_strided_slice %7 {offsets = [0, 17], sizes = [4, 495], strides = [1, 1]} : vector<4x512xf32> to vector<4x495xf32>
    %85 = vector.extract_strided_slice %7 {offsets = [0, 0], sizes = [4, 17], strides = [1, 1]} : vector<4x512xf32> to vector<4x17xf32>
    %86 = tpu.concatenate %84, %85 in 1 : vector<4x495xf32>, vector<4x17xf32> -> vector<4x512xf32>
    %c0_i32_19 = arith.constant 0 : i32
    %87 = arith.sitofp %c0_i32_19 : i32 to f32
    %88 = vector.shape_cast %19 : vector<1x512xi1> to vector<1x512xi1>
    %89 = vector.broadcast %88 : vector<1x512xi1> to vector<4x512xi1>
    %90 = vector.broadcast %87 : f32 to vector<4x512xf32>
    %91 = arith.select %89, %86, %90 : vector<4x512xi1>, vector<4x512xf32>
    %c32 = arith.constant 32 : index
    %c0_20 = arith.constant 0 : index
    %92 = vector.load %arg11[%c32, %c0_20] : memref<36x512xf32, #tpu.memory_space<vmem>>, vector<4x512xf32>
    tpu.vector_store %arg11[%c32, %c0_20], %91 {strides = array<i32>} : memref<36x512xf32, #tpu.memory_space<vmem>>, vector<4x512xf32>,
    %c0_21 = arith.constant 0 : index
    %c0_22 = arith.constant 0 : index
    %93 = vector.load %arg2[%c0_21, %c0_22] : memref<8x36xf32, #tpu.memory_space<vmem>>, vector<8x36xf32>
    %c0_23 = arith.constant 0 : index
    %c0_24 = arith.constant 0 : index
    %94 = vector.load %arg11[%c0_23, %c0_24] : memref<36x512xf32, #tpu.memory_space<vmem>>, vector<36x512xf32>
    %cst = arith.constant dense<0.000000e+00> : vector<8x512xf32>
    %95 = tpu.matmul %93, %94, %cst {dimension_numbers = #tpu.dot_dimension_numbers<[1], [0], [0], [1], [0, 0, 1, 1], [], []>} : vector<8x36xf32>, vector<36x512xf32>, vector<8x512xf32> -> vector<8x512xf32>
    %c0_25 = arith.constant 0 : index
    %c0_26 = arith.constant 0 : index
    %96 = vector.load %arg3[%c0_25, %c0_26] : memref<8x1xf32, #tpu.memory_space<vmem>>, vector<8x1xf32>
    %97 = vector.broadcast %96 : vector<8x1xf32> to vector<8x512xf32>
    %98 = arith.addf %95, %97 : vector<8x512xf32>
    %cst_27 = arith.constant 0.000000e+00 : f32
    %99 = vector.broadcast %cst_27 : f32 to vector<8x512xf32>
    %100 = arith.maximumf %98, %99 : vector<8x512xf32>
    %101 = vector.extract_strided_slice %100 {offsets = [0, 495], sizes = [8, 17], strides = [1, 1]} : vector<8x512xf32> to vector<8x17xf32>
    %102 = vector.extract_strided_slice %100 {offsets = [0, 0], sizes = [8, 495], strides = [1, 1]} : vector<8x512xf32> to vector<8x495xf32>
    %103 = tpu.concatenate %101, %102 in 1 : vector<8x17xf32>, vector<8x495xf32> -> vector<8x512xf32>
    %c0_i32_28 = arith.constant 0 : i32
    %104 = arith.sitofp %c0_i32_28 : i32 to f32
    %105 = vector.shape_cast %16 : vector<1x512xi1> to vector<1x512xi1>
    %106 = vector.broadcast %105 : vector<1x512xi1> to vector<8x512xi1>
    %107 = vector.broadcast %104 : f32 to vector<8x512xf32>
    %108 = arith.select %106, %103, %107 : vector<8x512xi1>, vector<8x512xf32>
    %c0_29 = arith.constant 0 : index
    %c0_30 = arith.constant 0 : index
    %109 = vector.load %arg12[%c0_29, %c0_30] : memref<72x512xf32, #tpu.memory_space<vmem>>, vector<8x512xf32>
    tpu.vector_store %arg12[%c0_29, %c0_30], %108 {strides = array<i32>} : memref<72x512xf32, #tpu.memory_space<vmem>>, vector<8x512xf32>,
    %110 = vector.extract_strided_slice %100 {offsets = [0, 496], sizes = [8, 16], strides = [1, 1]} : vector<8x512xf32> to vector<8x16xf32>
    %111 = vector.extract_strided_slice %100 {offsets = [0, 0], sizes = [8, 496], strides = [1, 1]} : vector<8x512xf32> to vector<8x496xf32>
    %112 = tpu.concatenate %110, %111 in 1 : vector<8x16xf32>, vector<8x496xf32> -> vector<8x512xf32>
    %c0_i32_31 = arith.constant 0 : i32
    %113 = arith.sitofp %c0_i32_31 : i32 to f32
    %114 = vector.shape_cast %9 : vector<1x512xi1> to vector<1x512xi1>
    %115 = vector.broadcast %114 : vector<1x512xi1> to vector<8x512xi1>
    %116 = vector.broadcast %113 : f32 to vector<8x512xf32>
    %117 = arith.select %115, %112, %116 : vector<8x512xi1>, vector<8x512xf32>
    %c8_32 = arith.constant 8 : index
    %c0_33 = arith.constant 0 : index
    %118 = vector.load %arg12[%c8_32, %c0_33] : memref<72x512xf32, #tpu.memory_space<vmem>>, vector<8x512xf32>
    tpu.vector_store %arg12[%c8_32, %c0_33], %117 {strides = array<i32>} : memref<72x512xf32, #tpu.memory_space<vmem>>, vector<8x512xf32>,
    %119 = vector.extract_strided_slice %100 {offsets = [0, 497], sizes = [8, 15], strides = [1, 1]} : vector<8x512xf32> to vector<8x15xf32>
    %120 = vector.extract_strided_slice %100 {offsets = [0, 0], sizes = [8, 497], strides = [1, 1]} : vector<8x512xf32> to vector<8x497xf32>
    %121 = tpu.concatenate %119, %120 in 1 : vector<8x15xf32>, vector<8x497xf32> -> vector<8x512xf32>
    %c0_i32_34 = arith.constant 0 : i32
    %122 = arith.sitofp %c0_i32_34 : i32 to f32
    %123 = vector.shape_cast %17 : vector<1x512xi1> to vector<1x512xi1>
    %124 = vector.broadcast %123 : vector<1x512xi1> to vector<8x512xi1>
    %125 = vector.broadcast %122 : f32 to vector<8x512xf32>
    %126 = arith.select %124, %121, %125 : vector<8x512xi1>, vector<8x512xf32>
    %c16_35 = arith.constant 16 : index
    %c0_36 = arith.constant 0 : index
    %127 = vector.load %arg12[%c16_35, %c0_36] : memref<72x512xf32, #tpu.memory_space<vmem>>, vector<8x512xf32>
    tpu.vector_store %arg12[%c16_35, %c0_36], %126 {strides = array<i32>} : memref<72x512xf32, #tpu.memory_space<vmem>>, vector<8x512xf32>,
    %128 = vector.extract_strided_slice %100 {offsets = [0, 511], sizes = [8, 1], strides = [1, 1]} : vector<8x512xf32> to vector<8x1xf32>
    %129 = vector.extract_strided_slice %100 {offsets = [0, 0], sizes = [8, 511], strides = [1, 1]} : vector<8x512xf32> to vector<8x511xf32>
    %130 = tpu.concatenate %128, %129 in 1 : vector<8x1xf32>, vector<8x511xf32> -> vector<8x512xf32>
    %c0_i32_37 = arith.constant 0 : i32
    %131 = arith.sitofp %c0_i32_37 : i32 to f32
    %132 = vector.shape_cast %13 : vector<1x512xi1> to vector<1x512xi1>
    %133 = vector.broadcast %132 : vector<1x512xi1> to vector<8x512xi1>
    %134 = vector.broadcast %131 : f32 to vector<8x512xf32>
    %135 = arith.select %133, %130, %134 : vector<8x512xi1>, vector<8x512xf32>
    %c24_38 = arith.constant 24 : index
    %c0_39 = arith.constant 0 : index
    %136 = vector.load %arg12[%c24_38, %c0_39] : memref<72x512xf32, #tpu.memory_space<vmem>>, vector<8x512xf32>
    tpu.vector_store %arg12[%c24_38, %c0_39], %135 {strides = array<i32>} : memref<72x512xf32, #tpu.memory_space<vmem>>, vector<8x512xf32>,
    %c32_40 = arith.constant 32 : index
    %c0_41 = arith.constant 0 : index
    %137 = vector.load %arg12[%c32_40, %c0_41] : memref<72x512xf32, #tpu.memory_space<vmem>>, vector<8x512xf32>
    tpu.vector_store %arg12[%c32_40, %c0_41], %100 {strides = array<i32>} : memref<72x512xf32, #tpu.memory_space<vmem>>, vector<8x512xf32>,
    %138 = vector.extract_strided_slice %100 {offsets = [0, 1], sizes = [8, 511], strides = [1, 1]} : vector<8x512xf32> to vector<8x511xf32>
    %139 = vector.extract_strided_slice %100 {offsets = [0, 0], sizes = [8, 1], strides = [1, 1]} : vector<8x512xf32> to vector<8x1xf32>
    %140 = tpu.concatenate %138, %139 in 1 : vector<8x511xf32>, vector<8x1xf32> -> vector<8x512xf32>
    %c0_i32_42 = arith.constant 0 : i32
    %141 = arith.sitofp %c0_i32_42 : i32 to f32
    %142 = vector.shape_cast %15 : vector<1x512xi1> to vector<1x512xi1>
    %143 = vector.broadcast %142 : vector<1x512xi1> to vector<8x512xi1>
    %144 = vector.broadcast %141 : f32 to vector<8x512xf32>
    %145 = arith.select %143, %140, %144 : vector<8x512xi1>, vector<8x512xf32>
    %c40 = arith.constant 40 : index
    %c0_43 = arith.constant 0 : index
    %146 = vector.load %arg12[%c40, %c0_43] : memref<72x512xf32, #tpu.memory_space<vmem>>, vector<8x512xf32>
    tpu.vector_store %arg12[%c40, %c0_43], %145 {strides = array<i32>} : memref<72x512xf32, #tpu.memory_space<vmem>>, vector<8x512xf32>,
    %147 = vector.extract_strided_slice %100 {offsets = [0, 15], sizes = [8, 497], strides = [1, 1]} : vector<8x512xf32> to vector<8x497xf32>
    %148 = vector.extract_strided_slice %100 {offsets = [0, 0], sizes = [8, 15], strides = [1, 1]} : vector<8x512xf32> to vector<8x15xf32>
    %149 = tpu.concatenate %147, %148 in 1 : vector<8x497xf32>, vector<8x15xf32> -> vector<8x512xf32>
    %c0_i32_44 = arith.constant 0 : i32
    %150 = arith.sitofp %c0_i32_44 : i32 to f32
    %151 = vector.shape_cast %18 : vector<1x512xi1> to vector<1x512xi1>
    %152 = vector.broadcast %151 : vector<1x512xi1> to vector<8x512xi1>
    %153 = vector.broadcast %150 : f32 to vector<8x512xf32>
    %154 = arith.select %152, %149, %153 : vector<8x512xi1>, vector<8x512xf32>
    %c48 = arith.constant 48 : index
    %c0_45 = arith.constant 0 : index
    %155 = vector.load %arg12[%c48, %c0_45] : memref<72x512xf32, #tpu.memory_space<vmem>>, vector<8x512xf32>
    tpu.vector_store %arg12[%c48, %c0_45], %154 {strides = array<i32>} : memref<72x512xf32, #tpu.memory_space<vmem>>, vector<8x512xf32>,
    %156 = vector.extract_strided_slice %100 {offsets = [0, 16], sizes = [8, 496], strides = [1, 1]} : vector<8x512xf32> to vector<8x496xf32>
    %157 = vector.extract_strided_slice %100 {offsets = [0, 0], sizes = [8, 16], strides = [1, 1]} : vector<8x512xf32> to vector<8x16xf32>
    %158 = tpu.concatenate %156, %157 in 1 : vector<8x496xf32>, vector<8x16xf32> -> vector<8x512xf32>
    %c0_i32_46 = arith.constant 0 : i32
    %159 = arith.sitofp %c0_i32_46 : i32 to f32
    %160 = vector.shape_cast %11 : vector<1x512xi1> to vector<1x512xi1>
    %161 = vector.broadcast %160 : vector<1x512xi1> to vector<8x512xi1>
    %162 = vector.broadcast %159 : f32 to vector<8x512xf32>
    %163 = arith.select %161, %158, %162 : vector<8x512xi1>, vector<8x512xf32>
    %c56 = arith.constant 56 : index
    %c0_47 = arith.constant 0 : index
    %164 = vector.load %arg12[%c56, %c0_47] : memref<72x512xf32, #tpu.memory_space<vmem>>, vector<8x512xf32>
    tpu.vector_store %arg12[%c56, %c0_47], %163 {strides = array<i32>} : memref<72x512xf32, #tpu.memory_space<vmem>>, vector<8x512xf32>,
    %165 = vector.extract_strided_slice %100 {offsets = [0, 17], sizes = [8, 495], strides = [1, 1]} : vector<8x512xf32> to vector<8x495xf32>
    %166 = vector.extract_strided_slice %100 {offsets = [0, 0], sizes = [8, 17], strides = [1, 1]} : vector<8x512xf32> to vector<8x17xf32>
    %167 = tpu.concatenate %165, %166 in 1 : vector<8x495xf32>, vector<8x17xf32> -> vector<8x512xf32>
    %c0_i32_48 = arith.constant 0 : i32
    %168 = arith.sitofp %c0_i32_48 : i32 to f32
    %169 = vector.shape_cast %19 : vector<1x512xi1> to vector<1x512xi1>
    %170 = vector.broadcast %169 : vector<1x512xi1> to vector<8x512xi1>
    %171 = vector.broadcast %168 : f32 to vector<8x512xf32>
    %172 = arith.select %170, %167, %171 : vector<8x512xi1>, vector<8x512xf32>
    %c64 = arith.constant 64 : index
    %c0_49 = arith.constant 0 : index
    %173 = vector.load %arg12[%c64, %c0_49] : memref<72x512xf32, #tpu.memory_space<vmem>>, vector<8x512xf32>
    tpu.vector_store %arg12[%c64, %c0_49], %172 {strides = array<i32>} : memref<72x512xf32, #tpu.memory_space<vmem>>, vector<8x512xf32>,
    %c0_50 = arith.constant 0 : index
    %c0_51 = arith.constant 0 : index
    %174 = vector.load %arg4[%c0_50, %c0_51] : memref<8x72xf32, #tpu.memory_space<vmem>>, vector<8x72xf32>
    %c0_52 = arith.constant 0 : index
    %c0_53 = arith.constant 0 : index
    %175 = vector.load %arg12[%c0_52, %c0_53] : memref<72x512xf32, #tpu.memory_space<vmem>>, vector<72x512xf32>
    %cst_54 = arith.constant dense<0.000000e+00> : vector<8x512xf32>
    %176 = tpu.matmul %174, %175, %cst_54 {dimension_numbers = #tpu.dot_dimension_numbers<[1], [0], [0], [1], [0, 0, 1, 1], [], []>} : vector<8x72xf32>, vector<72x512xf32>, vector<8x512xf32> -> vector<8x512xf32>
    %c0_55 = arith.constant 0 : index
    %c0_56 = arith.constant 0 : index
    %177 = vector.load %arg5[%c0_55, %c0_56] : memref<8x1xf32, #tpu.memory_space<vmem>>, vector<8x1xf32>
    %178 = vector.broadcast %177 : vector<8x1xf32> to vector<8x512xf32>
    %179 = arith.addf %176, %178 : vector<8x512xf32>
    %c0_57 = arith.constant 0 : index
    %c0_58 = arith.constant 0 : index
    %180 = vector.load %arg6[%c0_57, %c0_58] : memref<8x4xf32, #tpu.memory_space<vmem>>, vector<8x4xf32>
    %cst_59 = arith.constant dense<0.000000e+00> : vector<8x512xf32>
    %181 = tpu.matmul %180, %7, %cst_59 {dimension_numbers = #tpu.dot_dimension_numbers<[1], [0], [0], [1], [0, 0, 1, 1], [], []>} : vector<8x4xf32>, vector<4x512xf32>, vector<8x512xf32> -> vector<8x512xf32>
    %c0_60 = arith.constant 0 : index
    %c0_61 = arith.constant 0 : index
    %182 = vector.load %arg7[%c0_60, %c0_61] : memref<8x1xf32, #tpu.memory_space<vmem>>, vector<8x1xf32>
    %183 = vector.broadcast %182 : vector<8x1xf32> to vector<8x512xf32>
    %184 = arith.addf %181, %183 : vector<8x512xf32>
    %185 = arith.addf %184, %179 : vector<8x512xf32>
    %cst_62 = arith.constant 0.000000e+00 : f32
    %186 = vector.broadcast %cst_62 : f32 to vector<8x512xf32>
    %187 = arith.maximumf %185, %186 : vector<8x512xf32>
    %c0_63 = arith.constant 0 : index
    %c0_64 = arith.constant 0 : index
    %188 = vector.load %arg8[%c0_63, %c0_64] : memref<8x8xf32, #tpu.memory_space<vmem>>, vector<8x8xf32>
    %cst_65 = arith.constant dense<0.000000e+00> : vector<8x512xf32>
    %189 = tpu.matmul %188, %187, %cst_65 {dimension_numbers = #tpu.dot_dimension_numbers<[1], [0], [0], [1], [0, 0, 1, 1], [], []>} : vector<8x8xf32>, vector<8x512xf32>, vector<8x512xf32> -> vector<8x512xf32>
    %c0_66 = arith.constant 0 : index
    %c0_67 = arith.constant 0 : index
    %190 = vector.load %arg9[%c0_66, %c0_67] : memref<8x1xf32, #tpu.memory_space<vmem>>, vector<8x1xf32>
    %191 = vector.broadcast %190 : vector<8x1xf32> to vector<8x512xf32>
    %192 = arith.addf %189, %191 : vector<8x512xf32>
    %c0_68 = arith.constant 0 : index
    %c0_69 = arith.constant 0 : index
    %193 = vector.load %arg10[%c0_68, %c0_69] : memref<8x512xf32, #tpu.memory_space<vmem>>, vector<8x512xf32>
    tpu.vector_store %arg10[%c0_68, %c0_69], %192 {strides = array<i32>} : memref<8x512xf32, #tpu.memory_space<vmem>>, vector<8x512xf32>,
    return
  }
  func.func @transform_0(%arg0: i32) -> (i32, i32) {
    %c0_i32 = arith.constant 0 : i32
    %c0_i32_0 = arith.constant 0 : i32
    return %c0_i32, %arg0 : i32, i32
  }
  func.func @transform_1(%arg0: i32) -> (i32, i32) {
    %c0_i32 = arith.constant 0 : i32
    %c0_i32_0 = arith.constant 0 : i32
    %c0_i32_1 = arith.constant 0 : i32
    return %c0_i32, %c0_i32_0 : i32, i32
  }
  func.func @transform_2(%arg0: i32) -> (i32, i32) {
    %c0_i32 = arith.constant 0 : i32
    %c0_i32_0 = arith.constant 0 : i32
    %c0_i32_1 = arith.constant 0 : i32
    return %c0_i32, %c0_i32_0 : i32, i32
  }
  func.func @transform_3(%arg0: i32) -> (i32, i32) {
    %c0_i32 = arith.constant 0 : i32
    %c0_i32_0 = arith.constant 0 : i32
    %c0_i32_1 = arith.constant 0 : i32
    return %c0_i32, %c0_i32_0 : i32, i32
  }
  func.func @transform_4(%arg0: i32) -> (i32, i32) {
    %c0_i32 = arith.constant 0 : i32
    %c0_i32_0 = arith.constant 0 : i32
    %c0_i32_1 = arith.constant 0 : i32
    return %c0_i32, %c0_i32_0 : i32, i32
  }
  func.func @transform_5(%arg0: i32) -> (i32, i32) {
    %c0_i32 = arith.constant 0 : i32
    %c0_i32_0 = arith.constant 0 : i32
    %c0_i32_1 = arith.constant 0 : i32
    return %c0_i32, %c0_i32_0 : i32, i32
  }
  func.func @transform_6(%arg0: i32) -> (i32, i32) {
    %c0_i32 = arith.constant 0 : i32
    %c0_i32_0 = arith.constant 0 : i32
    %c0_i32_1 = arith.constant 0 : i32
    return %c0_i32, %c0_i32_0 : i32, i32
  }
  func.func @transform_7(%arg0: i32) -> (i32, i32) {
    %c0_i32 = arith.constant 0 : i32
    %c0_i32_0 = arith.constant 0 : i32
    %c0_i32_1 = arith.constant 0 : i32
    return %c0_i32, %c0_i32_0 : i32, i32
  }
  func.func @transform_8(%arg0: i32) -> (i32, i32) {
    %c0_i32 = arith.constant 0 : i32
    %c0_i32_0 = arith.constant 0 : i32
    %c0_i32_1 = arith.constant 0 : i32
    return %c0_i32, %c0_i32_0 : i32, i32
  }
  func.func @transform_9(%arg0: i32) -> (i32, i32) {
    %c0_i32 = arith.constant 0 : i32
    %c0_i32_0 = arith.constant 0 : i32
    return %c0_i32, %arg0 : i32, i32
  }
}

</mosaic_0001>

<bundles_post_ra>
// kernel: tpu_custom_call.1
= control target key start
LH: loop header
LB: loop body
LE: loop exit
PB: predicated region body
PF: predicated region fallthrough
CT: control target
= control target key end

     0   :  { %s1426_s13 = smov 112   ;;  %s2109_s0 = inlined_call_operand.vmem [shape: f32[4,512], index: 0, kind: input, shape index: {}]   ;;  %s2110_s1 = inlined_call_operand.vmem [shape: f32[8,36], index: 1, kind: input, shape index: {}]   ;;  %s2111_s2 = inlined_call_operand.vmem [shape: f32[8,1], index: 2, kind: input, shape index: {}]   ;;  %s2112_s3 = inlined_call_operand.vmem [shape: f32[8,72], index: 3, kind: input, shape index: {}]   ;;  %s2113_s4 = inlined_call_operand.vmem [shape: f32[8,1], index: 4, kind: input, shape index: {}]   ;;  %s2114_s5 = inlined_call_operand.vmem [shape: f32[8,4], index: 5, kind: input, shape index: {}]   ;;  %s2115_s6 = inlined_call_operand.vmem [shape: f32[8,1], index: 6, kind: input, shape index: {}]   ;;  %s2116_s7 = inlined_call_operand.vmem [shape: f32[8,8], index: 7, kind: input, shape index: {}]   ;;  %s2117_s8 = inlined_call_operand.vmem [shape: f32[8,1], index: 8, kind: input, shape index: {}]   ;;  %s2118_s9 = inlined_call_operand.hbm [shape: f32[8,512], index: 9, kind: output, shape index: {}]  }
   0x1   :  { %v1490_v0 = vld [vmem:[%s2109_s0 + $0x8] sm:$0xff]  ;;  %v1495_v1 = vld [vmem:[%s2109_s0] sm:$0xff] }
   0x2   :  { %338 = vrot.lane.b32.xlu1 %v1490_v0, %s1426_s13  ;;  %252 = vst [vmem:[#allocation2 + $0x28] sm:$0xf] %v1490_v0  ;;  %334 = vrot.lane.b32.xlu0 %v1495_v1, %s1426_s13  ;;  %250 = vst [vmem:[#allocation2 + $0x8] sm:$0xf] %v1495_v1  ;;  %v1505_v2 = vcombine.high %v1490_v0, %v1490_v0  ;;  %v1509_v3 = vcombine.high %v1495_v1, %v1495_v1 }
   0x3   :  { %14 = vsyncpa [#allocation5], 0  ;;  %s1427_s0 = smov 111   ;;  %s1428_s14 = smov 127   ;;  %v1434_v4 = vmov 0.0   ;;  %v1435_v5 = vmov 0   ;;  %v33_v7 = vlaneseq }
   0x4   :  { %253 = vst [vmem:[#allocation2 + $0x40] sm:$0xf] %v1505_v2  ;;  %251 = vst [vmem:[#allocation2 + $0x88] sm:$0xf] %v1509_v3  ;;  %s1429_s15 = smov 113   ;;  %s1430_s16 = smov 1   ;;  %522 = vmatprep.mubr.f32.mxu0 %v1434_v4  ;;  %593 = vmatprep.mubr.f32.mxu1 %v1434_v4 }
   0x5   :  { %s1431_s17 = smov 16   ;;  %s1432_s18 = smov 15   ;;  %1400 = vset.pattern.permute.xlu0 %v1435_v5  ;;  %v435_v6 = vld [vmem:[%s2111_s2] sm:$0xff]  ;;  %1401 = vset.pattern.permute.xlu1 %v1435_v5  ;;  %v1578_v8 = vand.u32 127, %v33_v7  ;;  %vm2119_vm0 = vcmask 916480   ;;  %vm2120_vm1 = vcmask 908288  }
   0x6   :  { %340 = vrot.lane.b32.xlu1 %v1505_v2, %s1426_s13  ;;  %336 = vrot.lane.b32.xlu0 %v1509_v3, %s1426_s13  ;;  %s1433_s19 = smov 17   ;;  %v2157_v43 = vmov 0  ;;  %v2161_v48 = vmov 0  ;;  %v2165_v51 = vmov 0  ;;  %vm2122_vm14 = vcmask 1039360   ;;  %s1436_s29 = smov [#allocation4]  }
   0x7   :  { %v1581_v9 = vadd.s32 256, %v1578_v8  ;;  %v1584_v10 = vadd.s32 384, %v1578_v8  ;;  %v1587_v11 = vadd.s32 128, %v1578_v8  ;;  %v42_v14 = vshra.s32 %v1578_v8, 4  ;;  %s1333_s30 = sshll.u32 %s1436_s29, 4  ;;  %s1334_s30 = int_to_ptr.vmem [resolvable:$true] %s1333_s30 }
   0x8   :  { %v38_v22 = vand.u32 15, %v1578_v8  ;;  %vm2129_vm15 = vcmask 1043456   ;;  %p1409_p1 = scmp.lt.s32.totalorder %s1334_s30, %s1334_s30 }
   0x9   :  { %v44_v12 = vshra.s32 %v1581_v9, 4  ;;  %v45_v13 = vshra.s32 %v1584_v10, 4  ;;  %v43_v15 = vshra.s32 %v1587_v11, 4  ;;  %v1597_v18 = vand.u32 15, %v42_v14 }
   0xa   :  { %382 = vrot.lane.b32.xlu1 %v1509_v3, %s1427_s0  ;;  %380 = vrot.lane.b32.xlu0 %v1495_v1, %s1427_s0  ;;  %v41_v23 = vand.u32 15, %v1584_v10  ;;  %v39_v24 = vand.u32 15, %v1587_v11  ;;  %vm1608_vm6 = vcmp.le.s32.totalorder %v38_v22, 14  ;;  %v40_v29 = vand.u32 15, %v1581_v9 }
   0xb   :  { %v1593_v16 = vand.u32 15, %v44_v12  ;;  %v1595_v17 = vand.u32 15, %v45_v13  ;;  %v1599_v19 = vand.u32 15, %v43_v15  ;;  %vm2125_vm4 = vcmp.le.s32.totalorder %v1597_v18, 14 }
   0xc   :  { %vm1614_vm7 = vcmp.le.s32.totalorder %v41_v23, 14  ;;  %vm1621_vm8 = vcmp.le.s32.totalorder %v39_v24, 14  ;;  %vm1641_vm9 = vmand %vm2125_vm4, %vm1608_vm6  ;;  %vm1647_vm10 = vcmp.le.s32.totalorder %v40_v29, 14 }
   0xd   :  { %vm2121_vm2 = vcmp.le.s32.totalorder %v1593_v16, 14  ;;  %vm2124_vm3 = vcmp.le.s32.totalorder %v1595_v17, 14  ;;  %vm2123_vm5 = vcmp.le.s32.totalorder %v1599_v19, 14  ;;  %v2158_v43 = vsel %vm1641_vm9, 4294967295, %v2157_v43 }
   0xe   :  { %386 = vrot.lane.b32.xlu1 %v1505_v2, %s1427_s0  ;;  %384 = vrot.lane.b32.xlu0 %v1490_v0, %s1427_s0  ;;  %vm1656_vm11 = vmand %vm2124_vm3, %vm1614_vm7 }
   0xf   :  { %v2162_v48 = vsel %vm1656_vm11, 4294967295, %v2161_v48  ;;  %vm1666_vm12 = vmand %vm2123_vm5, %vm1621_vm8 }
  0x10   :  { %vm1674_vm13 = vmand %vm2121_vm2, %vm1647_vm10 }
  0x11   :  { %v2166_v51 = vsel %vm1674_vm13, 4294967295, %v2165_v51 }
  0x12   :  { %256 = vrot.lane.b32.xlu1 %v1509_v3, %s1428_s14  ;;  %254 = vrot.lane.b32.xlu0 %v1495_v1, %s1428_s14 }
  0x16   :  { %260 = vrot.lane.b32.xlu1 %v1505_v2, %s1428_s14  ;;  %258 = vrot.lane.b32.xlu0 %v1490_v0, %s1428_s14 }
  0x1a   :  { %302 = vrot.lane.b32.xlu1 %v1509_v3, %s1429_s15  ;;  %300 = vrot.lane.b32.xlu0 %v1495_v1, %s1429_s15 }
  0x1e   :  { %306 = vrot.lane.b32.xlu1 %v1505_v2, %s1429_s15  ;;  %304 = vrot.lane.b32.xlu0 %v1490_v0, %s1429_s15 }
  0x22   :  { %205 = vrot.lane.b32.xlu1 %v1495_v1, %s1430_s16  ;;  %202 = vrot.lane.b32.xlu0 %v1505_v2, %s1430_s16 }
  0x26   :  { %209 = vrot.lane.b32.xlu1 %v1490_v0, %s1430_s16  ;;  %207 = vrot.lane.b32.xlu0 %v1509_v3, %s1430_s16 }
  0x2a   :  { %125 = vrot.lane.b32.xlu1 %v1495_v1, %s1431_s17  ;;  %122 = vrot.lane.b32.xlu0 %v1505_v2, %s1431_s17 }
  0x2e   :  { %129 = vrot.lane.b32.xlu1 %v1490_v0, %s1431_s17  ;;  %127 = vrot.lane.b32.xlu0 %v1509_v3, %s1431_s17 }
  0x32   :  { %171 = vrot.lane.b32.xlu1 %v1495_v1, %s1432_s18  ;;  %168 = vrot.lane.b32.xlu0 %v1505_v2, %s1432_s18 }
  0x36   :  { %175 = vrot.lane.b32.xlu1 %v1490_v0, %s1432_s18  ;;  %173 = vrot.lane.b32.xlu0 %v1509_v3, %s1432_s18 }
  0x3a   :  { %91 = vrot.lane.b32.xlu1 %v1495_v1, %s1433_s19  ;;  %86 = vrot.lane.b32.xlu0 %v1505_v2, %s1433_s19 }
  0x3e   :  { %95 = vrot.lane.b32.xlu1 %v1490_v0, %s1433_s19  ;;  %93 = vrot.lane.b32.xlu0 %v1509_v3, %s1433_s19 }
  0x42   :  { %438 = vperm.xlu0 %1400, %v435_v6  }
  0x74   :  { %v339_v20 = vpop.permute.xlu1 %338  ;;  %v335_v21 = vpop.permute.xlu0 %334 }
  0x78   :  { %v341_v25 = vpop.permute.xlu1 %340  ;;  %v337_v26 = vpop.permute.xlu0 %336 }
  0x79   :  { %v345_v31 = vsel %vm2119_vm0, %v339_v20, %v341_v25  ;;  %v351_v32 = vsel %vm2119_vm0, %v341_v25, %v335_v21  ;;  %v343_v33 = vsel %vm2119_vm0, %v335_v21, %v337_v26  ;;  %v344_v34 = vsel %vm2119_vm0, %v337_v26, %v339_v20 }
  0x7a   :  { %v362_v35 = vsel %vm2121_vm2, %v345_v31, 0.0  ;;  %v363_v36 = vsel %vm2124_vm3, %v351_v32, 0.0  ;;  %v360_v37 = vsel %vm2125_vm4, %v343_v33, 0.0  ;;  %v361_v38 = vsel %vm2123_vm5, %v344_v34, 0.0 }
  0x7b   :  { %v370_v39 = vrot.slane %v362_v35, 4  ;;  %v371_v40 = vrot.slane %v363_v36, 4  ;;  %v368_v41 = vrot.slane %v360_v37, 4  ;;  %v369_v42 = vrot.slane %v361_v38, 4 }
  0x7c   :  { %v383_v44 = vpop.permute.xlu1 %382  ;;  %v381_v45 = vpop.permute.xlu0 %380  ;;  %vm1690_vm0 = vcmp.ge.s32.totalorder %v38_v22, 1  ;;  %vm1705_vm2 = vcmp.ge.s32.totalorder %v41_v23, 1  ;;  %v2169_v26 = vmov 0  ;;  %v2171_v35 = vmov 0 }
  0x7d   :  { %378 = vst [vmem:[#allocation2 + $0x98] sm:$0xf0] %v370_v39  ;;  %379 = vst [vmem:[#allocation2 + $0x60] sm:$0xf0] %v371_v40  ;;  %v389_v47 = vsel %vm2120_vm1, %v381_v45, %v383_v44  ;;  %v2170_v26 = vsel %vm1705_vm2, 4294967295, %v2169_v26  ;;  %vm1720_vm5 = vcmp.ge.s32.totalorder %v39_v24, 1 }
  0x7e   :  { %376 = vst [vmem:[#allocation2 + $0x58] sm:$0xf0] %v368_v41  ;;  %377 = vst [vmem:[#allocation2 + $0x10] sm:$0xf0] %v369_v42  ;;  %v406_v49 = vsel %vm1641_vm9, %v389_v47, 0.0  ;;  %vm1728_vm3 = vcmp.ge.s32.totalorder %v40_v29, 1 }
  0x7f   :  { %410 = vst [vmem:[#allocation2 + $0x20] sm:$0xf] %v406_v49  ;;  %v2178_v24 = vmov 0  ;;  %v2181_v29 = vmov 0  ;;  %v2184_v39 = vmov 0 }
  0x80   :  { %v387_v52 = vpop.permute.xlu1 %386  ;;  %v385_v53 = vpop.permute.xlu0 %384 }
  0x81   :  { %v397_v54 = vsel %vm2120_vm1, %v387_v52, %v381_v45  ;;  %v390_v55 = vsel %vm2120_vm1, %v383_v44, %v385_v53  ;;  %v391_v56 = vsel %vm2120_vm1, %v385_v53, %v387_v52  ;;  %vm2131_vm1 = vcmask 924672  }
  0x82   :  { %v409_v57 = vsel %vm1656_vm11, %v397_v54, 0.0  ;;  %v407_v58 = vsel %vm1666_vm12, %v390_v55, 0.0  ;;  %v408_v59 = vsel %vm1674_vm13, %v391_v56, 0.0  ;;  %vm2180_vm11 = vcmp.le.s32.totalorder %v1599_v19, 14 }
  0x83   :  { %413 = vst [vmem:[#allocation2 + $0x90] sm:$0xf] %v409_v57  ;;  %411 = vst [vmem:[#allocation2 + $0x48] sm:$0xf] %v407_v58 }
  0x84   :  { %412 = vst [vmem:[#allocation2 + $0x70] sm:$0xf] %v408_v59  ;;  %v257_v60 = vpop.permute.xlu1 %256  ;;  %v255_v61 = vpop.permute.xlu0 %254  ;;  %vm1748_vm9 = vmand %vm2180_vm11, %vm1720_vm5  ;;  %vm2130_vm11 = vcmask 7168  }
  0x85   :  { %v263_v62 = vsel %vm2122_vm14, %v255_v61, %v257_v60  ;;  %v2182_v29 = vsel %vm1748_vm9, 4294967295, %v2181_v29 }
  0x86   :  { %v280_v63 = vsel %vm1608_vm6, %v263_v62, 0.0  ;;  %v431_v15 = vld [vmem:[#allocation2 + $0x20] sm:$0xf] }
  0x87   :  { %v288_v5 = vrot.slane %v280_v63, 4 }
  0x88   :  { %v261_v6 = vpop.permute.xlu1 %260  ;;  %v259_v7 = vpop.permute.xlu0 %258 }
  0x89   :  { %296 = vst [vmem:[#allocation2 + $0x8] sm:$0xf0] %v288_v5  ;;  %v271_v12 = vsel %vm2122_vm14, %v261_v6, %v255_v61  ;;  %v264_v13 = vsel %vm2122_vm14, %v257_v60, %v259_v7  ;;  %v265_v14 = vsel %vm2122_vm14, %v259_v7, %v261_v6  ;;  %vm1714_vm14 = vmand %vm2125_vm4, %vm1690_vm0  ;;  %vm2177_vm4 = vcmp.le.s32.totalorder %v1595_v17, 14 }
  0x8a   :  { %v283_v20 = vsel %vm1614_vm7, %v271_v12, 0.0  ;;  %v281_v21 = vsel %vm1621_vm8, %v264_v13, 0.0  ;;  %v282_v22 = vsel %vm1647_vm10, %v265_v14, 0.0  ;;  %v432_v25 = vld [vmem:[#allocation2 + $0x48] sm:$0xf]  ;;  %v2172_v35 = vsel %vm1714_vm14, 4294967295, %v2171_v35  ;;  %vm1738_vm13 = vmand %vm2177_vm4, %vm1705_vm2 }
  0x8b   :  { %v291_v31 = vrot.slane %v283_v20, 4  ;;  %v289_v32 = vrot.slane %v281_v21, 4  ;;  %v290_v33 = vrot.slane %v282_v22, 4  ;;  %1341 = vmatprep.subr.msk.mxu0 %vm2129_vm15, %v432_v25  ;;  %v434_v34 = vld [vmem:[#allocation2 + $0x90] sm:$0xf]  ;;  %v2179_v24 = vsel %vm1738_vm13, 4294967295, %v2178_v24 }
  0x8c   :  { %1344 = vmatprep.subr.msk.mxu1 %vm2129_vm15, %v434_v34  ;;  %v303_v23 = vpop.permute.xlu1 %302  ;;  %v301_v36 = vpop.permute.xlu0 %300  ;;  %1342 = vmatpush1.msk.msra.mxu0 %vm2129_vm15, %v431_v15  ;;  %v433_v37 = vld [vmem:[#allocation2 + $0x70] sm:$0xf] }
  0x8d   :  { %299 = vst [vmem:[#allocation2 + $0x40] sm:$0xf0] %v291_v31  ;;  %297 = vst [vmem:[#allocation2 + $0x88] sm:$0xf0] %v289_v32  ;;  %v309_v11 = vsel %vm2131_vm1, %v301_v36, %v303_v23  ;;  %1345 = vmatpush1.msk.msra.mxu1 %vm2129_vm15, %v433_v37  ;;  %vm2183_vm15 = vcmp.le.s32.totalorder %v1593_v16, 14 }
  0x8e   :  { %298 = vst [vmem:[#allocation2 + $0x28] sm:$0xf0] %v290_v33  ;;  %v326_v9 = vsel %vm1714_vm14, %v309_v11, 0.0  ;;  %vm1756_vm4 = vmand %vm2183_vm15, %vm1728_vm3  ;;  %vm2137_vm15 = vcmask 130048   ;;  %vm2186_vm14 = vcmp.ge.s32.totalorder %v1597_v18, 1 }
  0x8f   :  { %330 = vst [vmem:[#allocation2 + $0x58] sm:$0xf] %v326_v9  ;;  %v2185_v39 = vsel %vm1756_vm4, 4294967295, %v2184_v39 }
  0x90   :  { %v307_v40 = vpop.permute.xlu1 %306  ;;  %v305_v41 = vpop.permute.xlu0 %304  ;;  %v423_v34 = vld [vmem:[#allocation2 + $0x8] sm:$0xff] }
  0x91   :  { %v317_v42 = vsel %vm2131_vm1, %v307_v40, %v301_v36  ;;  %v310_v44 = vsel %vm2131_vm1, %v303_v23, %v305_v41  ;;  %v311_v45 = vsel %vm2131_vm1, %v305_v41, %v307_v40  ;;  %vm2138_vm1 = vcmp.ge.s32.totalorder %v1595_v17, 1 }
  0x92   :  { %v329_v47 = vsel %vm1738_vm13, %v317_v42, 0.0  ;;  %v327_v49 = vsel %vm1748_vm9, %v310_v44, 0.0  ;;  %v328_v52 = vsel %vm1756_vm4, %v311_v45, 0.0  ;;  %vm2140_vm4 = vcmp.ge.s32.totalorder %v1599_v19, 1  ;;  %vm1801_vm9 = vmand %vm2186_vm14, %vm1608_vm6 }
  0x93   :  { %333 = vst [vmem:[#allocation2 + $0x60] sm:$0xf] %v329_v47  ;;  %331 = vst [vmem:[#allocation2 + $0x10] sm:$0xf] %v327_v49  ;;  %vm2139_vm13 = vcmp.ge.s32.totalorder %v1593_v16, 1 }
  0x94   :  { %332 = vst [vmem:[#allocation2 + $0x98] sm:$0xf] %v328_v52  ;;  %v206_v53 = vpop.permute.xlu1 %205  ;;  %v203_v54 = vpop.permute.xlu0 %202  ;;  %v424_v31 = vld [vmem:[#allocation2 + $0x88] sm:$0xff]  ;;  %v426_v32 = vld [vmem:[#allocation2 + $0x40] sm:$0xff]  ;;  %vm1820_vm14 = vmand %vm2140_vm4, %vm1621_vm8 }
  0x95   :  { %v219_v55 = vsel %vm2130_vm11, %v203_v54, %v206_v53  ;;  %v425_v23 = vld [vmem:[#allocation2 + $0x28] sm:$0xff] }
  0x96   :  { %v228_v56 = vsel %vm1690_vm0, %v219_v55, 0.0  ;;  %v427_v21 = vld [vmem:[#allocation2 + $0x58] sm:$0xff] }
  0x97   :  { %v236_v57 = vrot.slane %v228_v56, 4 }
  0x98   :  { %v210_v58 = vpop.permute.xlu1 %209  ;;  %v208_v59 = vpop.permute.xlu0 %207 }
  0x99   :  { %244 = vst [vmem:[#allocation2 + $0x30] sm:$0xf0] %v236_v57  ;;  %v214_v60 = vsel %vm2130_vm11, %v210_v58, %v203_v54  ;;  %v212_v61 = vsel %vm2130_vm11, %v206_v53, %v208_v59  ;;  %v213_v62 = vsel %vm2130_vm11, %v208_v59, %v210_v58  ;;  %vm2134_vm11 = vcmp.ge.s32.totalorder %v1597_v18, 1 }
  0x9a   :  { %v231_v63 = vsel %vm1705_vm2, %v214_v60, 0.0  ;;  %v229_v5 = vsel %vm1720_vm5, %v212_v61, 0.0  ;;  %v230_v6 = vsel %vm1728_vm3, %v213_v62, 0.0  ;;  %v428_v7 = vld [vmem:[#allocation2 + $0x10] sm:$0xff]  ;;  %v430_v12 = vld [vmem:[#allocation2 + $0x60] sm:$0xff]  ;;  %v2187_v54 = vmov 0 }
  0x9b   :  { %v429_v13 = vld [vmem:[#allocation2 + $0x98] sm:$0xff]  ;;  %v239_v14 = vrot.slane %v231_v63, 4  ;;  %v237_v15 = vrot.slane %v229_v5, 4  ;;  %v238_v20 = vrot.slane %v230_v6, 4  ;;  %482 = vmatprep.subr.mxu0 %v428_v7  ;;  %553 = vmatprep.subr.mxu1 %v430_v12  ;;  %v2188_v54 = vsel %vm1801_vm9, 4294967295, %v2187_v54 }
  0x9c   :  { %v126_v22 = vpop.permute.xlu1 %125  ;;  %v123_v25 = vpop.permute.xlu0 %122  ;;  %483 = vmatpush1.msra.mxu0 %v427_v21  ;;  %554 = vmatpush1.msra.mxu1 %v429_v13  ;;  %v2189_v58 = vmov 0  ;;  %v2191_v60 = vmov 0  ;;  %v2193_v61 = vmov 0 }
  0x9d   :  { %247 = vst [vmem:[#allocation2 + $0x80] sm:$0xf0] %v239_v14  ;;  %245 = vst [vmem:[#allocation2 + $0x68] sm:$0xf0] %v237_v15  ;;  %v139_v33 = vsel %vm2137_vm15, %v123_v25, %v126_v22  ;;  %484 = vmatprep.subr.mxu0 %v424_v31  ;;  %555 = vmatprep.subr.mxu1 %v426_v32  ;;  %v2192_v60 = vsel %vm1820_vm14, 4294967295, %v2191_v60  ;;  %v2196_v15 = vmov 0 }
  0x9e   :  { %246 = vst [vmem:[#allocation2 + $0x78] sm:$0xf0] %v238_v20  ;;  %v148_v36 = vsel %vm2134_vm11, %v139_v33, 0.0  ;;  %485 = vmatpush1.msra.mxu0 %v423_v34  ;;  %556 = vmatpush1.msra.mxu1 %v425_v23  ;;  %vm2142_vm11 = vcmask 121856   ;;  %v2205_v33 = vmov 0 }
  0x9f   :  { %v156_v37 = vrot.slane %v148_v36, 4 }
  0xa0   :  { %v130_v11 = vpop.permute.xlu1 %129  ;;  %v128_v9 = vpop.permute.xlu0 %127 }
  0xa1   :  { %164 = vst [vmem:[#allocation2] sm:$0xf0] %v156_v37  ;;  %v134_v40 = vsel %vm2137_vm15, %v130_v11, %v123_v25  ;;  %v132_v41 = vsel %vm2137_vm15, %v126_v22, %v128_v9  ;;  %v133_v42 = vsel %vm2137_vm15, %v128_v9, %v130_v11  ;;  %vm1810_vm15 = vmand %vm2138_vm1, %vm1614_vm7  ;;  %v2199_v25 = vmov 0 }
  0xa2   :  { %v151_v44 = vsel %vm2138_vm1, %v134_v40, 0.0  ;;  %v149_v45 = vsel %vm2140_vm4, %v132_v41, 0.0  ;;  %v150_v47 = vsel %vm2139_vm13, %v133_v42, 0.0  ;;  %v2190_v58 = vsel %vm1810_vm15, 4294967295, %v2189_v58  ;;  %vm1828_vm1 = vmand %vm2139_vm13, %vm1647_vm10 }
  0xa3   :  { %v159_v49 = vrot.slane %v151_v44, 4  ;;  %v157_v52 = vrot.slane %v149_v45, 4  ;;  %v158_v53 = vrot.slane %v150_v47, 4  ;;  %v2194_v61 = vsel %vm1828_vm1, 4294967295, %v2193_v61 }
  0xa4   :  { %v172_v55 = vpop.permute.xlu1 %171  ;;  %v169_v56 = vpop.permute.xlu0 %168  ;;  %vm2145_vm13 = vcmask 138240   ;;  %vm2195_vm4 = vcmp.ge.s32.totalorder %v1597_v18, 1 }
  0xa5   :  { %167 = vst [vmem:[#allocation2 + $0x18] sm:$0xf0] %v159_v49  ;;  %165 = vst [vmem:[#allocation2 + $0x38] sm:$0xf0] %v157_v52  ;;  %v185_v57 = vsel %vm2142_vm11, %v169_v56, %v172_v55  ;;  %v414_v49 = vld [vmem:[%s2110_s1] sm:$0xff] }
  0xa6   :  { %166 = vst [vmem:[#allocation2 + $0x50] sm:$0xf0] %v158_v53  ;;  %v194_v59 = vsel %vm1801_vm9, %v185_v57, 0.0  ;;  %vm1845_vm9 = vmand %vm2195_vm4, %vm1690_vm0  ;;  %vm2201_vm4 = vcmp.ge.s32.totalorder %v1599_v19, 1 }
  0xa7   :  { %198 = vst [vmem:[#allocation2 + $0x30] sm:$0xf] %v194_v59  ;;  %v2197_v15 = vsel %vm1845_vm9, 4294967295, %v2196_v15 }
  0xa8   :  { %v176_v62 = vpop.permute.xlu1 %175  ;;  %v174_v63 = vpop.permute.xlu0 %173 }
  0xa9   :  { %v180_v5 = vsel %vm2142_vm11, %v176_v62, %v169_v56  ;;  %v178_v6 = vsel %vm2142_vm11, %v172_v55, %v174_v63  ;;  %v179_v7 = vsel %vm2142_vm11, %v174_v63, %v176_v62  ;;  %vm2198_vm11 = vcmp.ge.s32.totalorder %v1595_v17, 1 }
  0xaa   :  { %v197_v12 = vsel %vm1810_vm15, %v180_v5, 0.0  ;;  %v195_v13 = vsel %vm1820_vm14, %v178_v6, 0.0  ;;  %v196_v14 = vsel %vm1828_vm1, %v179_v7, 0.0  ;;  %vm1854_vm1 = vmand %vm2198_vm11, %vm1705_vm2 }
  0xab   :  { %201 = vst [vmem:[#allocation2 + $0x80] sm:$0xf] %v197_v12  ;;  %199 = vst [vmem:[#allocation2 + $0x68] sm:$0xf] %v195_v13  ;;  %v2200_v25 = vsel %vm1854_vm1, 4294967295, %v2199_v25 }
  0xac   :  { %200 = vst [vmem:[#allocation2 + $0x78] sm:$0xf] %v196_v14  ;;  %v92_v20 = vpop.permute.xlu1 %91  ;;  %v87_v21 = vpop.permute.xlu0 %86  ;;  %vm1864_vm15 = vmand %vm2201_vm4, %vm1720_vm5 }
  0xad   :  { %v105_v22 = vsel %vm2145_vm13, %v87_v21, %v92_v20  ;;  %vm2204_vm13 = vcmp.ge.s32.totalorder %v1593_v16, 1 }
  0xae   :  { %v114_v31 = vsel %vm1845_vm9, %v105_v22, 0.0  ;;  %vm1872_vm11 = vmand %vm2204_vm13, %vm1728_vm3  ;;  %vm2207_vm9 = vcmask 138240   ;;  %v419_v47 = vld [vmem:[#allocation2 + $0x30] sm:$0xff] }
  0xaf   :  { %118 = vst [vmem:[#allocation2] sm:$0xf] %v114_v31  ;;  %v2206_v33 = vsel %vm1872_vm11, 4294967295, %v2205_v33  ;;  %vm2208_vm2 = vmmov %vm2207_vm9  ;;  %v849_v31 = vld [vmem:[%s2113_s4] sm:$0xff] }
  0xb0   :  { %v96_v34 = vpop.permute.xlu1 %95  ;;  %v94_v23 = vpop.permute.xlu0 %93  ;;  %vm2209_vm14 = vmmov %vm2208_vm2 }
  0xb1   :  { %v100_v36 = vsel %vm2207_vm9, %v96_v34, %v87_v21  ;;  %v98_v37 = vsel %vm2208_vm2, %v92_v20, %v94_v23  ;;  %v99_v11 = vsel %vm2209_vm14, %v94_v23, %v96_v34  ;;  %vm441_vm2 = vcmask 293888   ;;  %v1171_v34 = vld [vmem:[%s2117_s8] sm:$0xff] }
  0xb2   :  { %v117_v9 = vsel %vm1854_vm1, %v100_v36, 0.0  ;;  %v115_v40 = vsel %vm1864_vm15, %v98_v37, 0.0  ;;  %v116_v41 = vsel %vm1872_vm11, %v99_v11, 0.0  ;;  %v420_v42 = vld [vmem:[#allocation2 + $0x68] sm:$0xff]  ;;  %v422_v44 = vld [vmem:[#allocation2 + $0x80] sm:$0xff]  ;;  %vm2210_vm9 = vcmask 908288  }
  0xb3   :  { %v421_v45 = vld [vmem:[#allocation2 + $0x78] sm:$0xff]  ;;  %121 = vst [vmem:[#allocation2 + $0x18] sm:$0xf] %v117_v9  ;;  %119 = vst [vmem:[#allocation2 + $0x38] sm:$0xf] %v115_v40  ;;  %486 = vmatprep.subr.mxu0 %v420_v42  ;;  %557 = vmatprep.subr.mxu1 %v422_v44  ;;  %v1002_v23 = vld [vmem:[%s2115_s6] sm:$0xff]  ;;  %vm2212_vm14 = vnez %v2158_v43  ;;  %vm2215_vm11 = vnez %v2162_v48  ;;  %vm2216_vm1 = vnez %v2166_v51 }
  0xb4   :  { %120 = vst [vmem:[#allocation2 + $0x50] sm:$0xf] %v116_v41  ;;  %487 = vmatpush1.msra.mxu0 %v419_v47  ;;  %558 = vmatpush1.msra.mxu1 %v421_v45  ;;  %vm2211_vm13 = vmmov %vm2210_vm9 }
  0xb5   :  { %vm2213_vm4 = vmmov %vm2210_vm9 }
  0xb6   :  { %v415_v56 = vld [vmem:[#allocation2] sm:$0xff] }
  0xba   :  { %v416_v52 = vld [vmem:[#allocation2 + $0x38] sm:$0xff] }
  0xbb   :  { %v418_v53 = vld [vmem:[#allocation2 + $0x18] sm:$0xff]  ;;  %v417_v55 = vld [vmem:[#allocation2 + $0x50] sm:$0xff]  ;;  %488 = vmatprep.subr.mxu0 %v416_v52 }
  0xbc   :  { %559 = vmatprep.subr.mxu1 %v418_v53  ;;  %489 = vmatpush1.msra.mxu0 %v415_v56 }
  0xbd   :  { %560 = vmatpush1.msra.mxu1 %v417_v55  ;;  %1343 = vmatmul.mubr.msk.f32.vlgmr.msra.gmra.mxu0 %vm441_vm2, %v414_v49  ;;  %v439_v57 = vpop.permute.xlu0 %438 }
  0xbe   :  { %1346 = vmatmul.mubr.msk.f32.vlgmr.msra.gmra.mxu1 %vm441_vm2, %v414_v49  ;;  %923 = vmatprep.mubr.f32.mxu0 %v1434_v4  ;;  %vm2214_vm2 = vmmov %vm2213_vm4 }
  0xbf   :  { %994 = vmatprep.mubr.f32.mxu1 %v1434_v4 }
 0x17d   :  { %v524_v59 = vpop.f32.mrf.mxu0 }
 0x17e   :  { %v595_v62 = vpop.f32.mrf.mxu1  ;;  %v525_v63 = vadd.f32 %v524_v59, %v439_v57 }
 0x17f   :  { %v596_v5 = vadd.f32 %v595_v62, %v439_v57  ;;  %v526_v12 = vpop.f32.mrf.mxu0 }
 0x180   :  { %v1890_v6 = vmax.f32 %v525_v63, 0.0  ;;  %v527_v13 = vadd.f32 %v526_v12, %v439_v57  ;;  %v597_v14 = vpop.f32.mrf.mxu1 }
 0x181   :  { %v1892_v7 = vmax.f32 %v596_v5, 0.0  ;;  %v598_v21 = vadd.f32 %v597_v14, %v439_v57 }
 0x182   :  { %787 = vrot.lane.b32.xlu1 %v1890_v6, %s1427_s0  ;;  %v1918_v20 = vmax.f32 %v527_v13, 0.0 }
 0x183   :  { %791 = vrot.lane.b32.xlu0 %v1892_v7, %s1427_s0  ;;  %v1924_v22 = vmax.f32 %v598_v21, 0.0 }
 0x186   :  { %686 = vrot.lane.b32.xlu1 %v1890_v6, %s1430_s16 }
 0x187   :  { %762 = vrot.lane.b32.xlu0 %v1890_v6, %s1426_s13 }
 0x18a   :  { %690 = vrot.lane.b32.xlu1 %v1892_v7, %s1430_s16 }
 0x18b   :  { %766 = vrot.lane.b32.xlu0 %v1892_v7, %s1426_s13 }
 0x18e   :  { %661 = vrot.lane.b32.xlu1 %v1890_v6, %s1432_s18 }
 0x18f   :  { %737 = vrot.lane.b32.xlu0 %v1890_v6, %s1429_s15 }
 0x192   :  { %665 = vrot.lane.b32.xlu1 %v1892_v7, %s1432_s18 }
 0x193   :  { %741 = vrot.lane.b32.xlu0 %v1892_v7, %s1429_s15 }
 0x196   :  { %636 = vrot.lane.b32.xlu1 %v1890_v6, %s1431_s17 }
 0x197   :  { %712 = vrot.lane.b32.xlu0 %v1890_v6, %s1428_s14 }
 0x19a   :  { %789 = vrot.lane.b32.xlu1 %v1918_v20, %s1427_s0 }
 0x19b   :  { %716 = vrot.lane.b32.xlu0 %v1892_v7, %s1428_s14 }
 0x19e   :  { %793 = vrot.lane.b32.xlu1 %v1924_v22, %s1427_s0 }
 0x19f   :  { %683 = vrot.lane.b32.xlu0 %v1924_v22, %s1430_s16 }
 0x1a2   :  { %764 = vrot.lane.b32.xlu1 %v1918_v20, %s1426_s13 }
 0x1a3   :  { %688 = vrot.lane.b32.xlu0 %v1918_v20, %s1430_s16 }
 0x1a6   :  { %768 = vrot.lane.b32.xlu1 %v1924_v22, %s1426_s13 }
 0x1a7   :  { %658 = vrot.lane.b32.xlu0 %v1924_v22, %s1432_s18 }
 0x1aa   :  { %739 = vrot.lane.b32.xlu1 %v1918_v20, %s1429_s15 }
 0x1ab   :  { %663 = vrot.lane.b32.xlu0 %v1918_v20, %s1432_s18 }
 0x1ae   :  { %743 = vrot.lane.b32.xlu1 %v1924_v22, %s1429_s15 }
 0x1af   :  { %633 = vrot.lane.b32.xlu0 %v1924_v22, %s1431_s17 }
 0x1b2   :  { %714 = vrot.lane.b32.xlu1 %v1918_v20, %s1428_s14 }
 0x1b3   :  { %638 = vrot.lane.b32.xlu0 %v1918_v20, %s1431_s17 }
 0x1b6   :  { %718 = vrot.lane.b32.xlu1 %v1924_v22, %s1428_s14 }
 0x1b7   :  { %605 = vrot.lane.b32.xlu0 %v1924_v22, %s1433_s19 }
 0x1ba   :  { %640 = vrot.lane.b32.xlu1 %v1892_v7, %s1431_s17 }
 0x1bb   :  { %613 = vrot.lane.b32.xlu0 %v1918_v20, %s1433_s19 }
 0x1be   :  { %611 = vrot.lane.b32.xlu1 %v1890_v6, %s1433_s19 }
 0x1bf   :  { %852 = vperm.xlu0 %1400, %v849_v31  }
 0x1c2   :  { %615 = vrot.lane.b32.xlu1 %v1892_v7, %s1433_s19 }
 0x1c3   :  { %1174 = vperm.xlu0 %1400, %v1171_v34  }
 0x1c6   :  { %1005 = vperm.xlu1 %1401, %v1002_v23  }
 0x1f4   :  { %v788_v37 = vpop.permute.xlu1 %787 }
 0x1f5   :  { %v792_v36 = vpop.permute.xlu0 %791 }
 0x1f8   :  { %v687_v9 = vpop.permute.xlu1 %686 }
 0x1f9   :  { %v763_v11 = vpop.permute.xlu0 %762 }
 0x1fc   :  { %v1971_v41 = vpop.permute.xlu1 %690 }
 0x1fd   :  { %v767_v40 = vpop.permute.xlu0 %766 }
 0x200   :  { %v662_v44 = vpop.permute.xlu1 %661 }
 0x201   :  { %v738_v42 = vpop.permute.xlu0 %737 }
 0x204   :  { %v1973_v47 = vpop.permute.xlu1 %665 }
 0x205   :  { %v742_v45 = vpop.permute.xlu0 %741 }
 0x208   :  { %v1975_v52 = vpop.permute.xlu1 %636 }
 0x209   :  { %v713_v49 = vpop.permute.xlu0 %712 }
 0x20c   :  { %v790_v55 = vpop.permute.xlu1 %789 }
 0x20d   :  { %v717_v53 = vpop.permute.xlu0 %716  ;;  %v795_v56 = vsel %vm2210_vm9, %v788_v37, %v790_v55  ;;  %v796_v57 = vsel %vm2211_vm13, %v790_v55, %v792_v36  ;;  %vm2217_vm9 = vcmask 916480   ;;  %vm2219_vm13 = vcmp.le.s32.totalorder %v1599_v19, 14 }
 0x20e   :  { %1357 = vmatprep.subr.msk.mxu0 %vm1666_vm12, %v796_v57  ;;  %vm2218_vm12 = vmmov %vm2217_vm9 }
 0x20f   :  { %1358 = vmatpush1.msk.msra.mxu0 %vm2212_vm14, %v795_v56  ;;  %vm2220_vm14 = vcmp.le.s32.totalorder %v1597_v18, 14 }
 0x210   :  { %v794_v62 = vpop.permute.xlu1 %793 }
 0x211   :  { %v684_v59 = vpop.permute.xlu0 %683  ;;  %v797_v63 = vsel %vm2213_vm4, %v792_v36, %v794_v62  ;;  %v803_v5 = vsel %vm2214_vm2, %v794_v62, %v788_v37  ;;  %vm2221_vm4 = vmmov %vm2217_vm9  ;;  %vm2224_vm2 = vcmp.le.s32.totalorder %v1593_v16, 14 }
 0x212   :  { %1373 = vmatprep.subr.msk.mxu1 %vm2215_vm11, %v803_v5  ;;  %vm2222_vm11 = vmmov %vm2221_vm4 }
 0x213   :  { %1374 = vmatpush1.msk.msra.mxu1 %vm2216_vm1, %v797_v63  ;;  %vm2223_vm1 = vcmp.le.s32.totalorder %v1595_v17, 14 }
 0x214   :  { %v765_v13 = vpop.permute.xlu1 %764 }
 0x215   :  { %v689_v12 = vpop.permute.xlu0 %688  ;;  %v770_v50 = vsel %vm2217_vm9, %v763_v11, %v765_v13  ;;  %v771_v14 = vsel %vm2218_vm12, %v765_v13, %v767_v40  ;;  %vm2225_vm9 = vcmask 924672  }
 0x216   :  { %1359 = vmatprep.subr.msk.mxu0 %vm2219_vm13, %v771_v14  ;;  %vm2226_vm12 = vmmov %vm2225_vm9  ;;  %vm2227_vm13 = vnez %v2182_v29 }
 0x217   :  { %1360 = vmatpush1.msk.msra.mxu0 %vm2220_vm14, %v770_v50  ;;  %vm2228_vm14 = vnez %v2172_v35 }
 0x218   :  { %v769_v21 = vpop.permute.xlu1 %768 }
 0x219   :  { %v659_v43 = vpop.permute.xlu0 %658  ;;  %v772_v48 = vsel %vm2221_vm4, %v767_v40, %v769_v21  ;;  %v778_v31 = vsel %vm2222_vm11, %v769_v21, %v763_v11  ;;  %vm2229_vm4 = vmmov %vm2225_vm9  ;;  %v1170_v21 = vld [vmem:[%s2116_s7] sm:$0xff]  ;;  %s1404_s7 = scalar_lea.vmem %s1334_s30, 512 }
 0x21a   :  { %1375 = vmatprep.subr.msk.mxu1 %vm2223_vm1, %v778_v31  ;;  %vm2230_vm11 = vmmov %vm2229_vm4  ;;  %vm2231_vm1 = vnez %v2179_v24  ;;  %p1405_p0 = scmp.ne.s32.totalorder %s1334_s30, %s1404_s7  ;;  %p1410_p2 = scmp.lt.s32.totalorder %s1404_s7, %s1404_s7 }
 0x21b   :  { %1376 = vmatpush1.msk.msra.mxu1 %vm2224_vm2, %v772_v48  ;;  %vm2232_vm2 = vnez %v2185_v39 }
 0x21c   :  { %v740_v34 = vpop.permute.xlu1 %739  ;;  %p1411_p3 = por %p1410_p2, %p1409_p1 }
 0x21d   :  { %v664_v51 = vpop.permute.xlu0 %663  ;;  %v745_v23 = vsel %vm2225_vm9, %v738_v42, %v740_v34  ;;  %v746_v36 = vsel %vm2226_vm12, %v740_v34, %v742_v45  ;;  %vm2233_vm9 = vcmask 1039360  }
 0x21e   :  { %1361 = vmatprep.subr.msk.mxu0 %vm2227_vm13, %v746_v36  ;;  %vm2234_vm12 = vmmov %vm2233_vm9  ;;  %vm2235_vm13 = vcmask 7168   ;;  %p1412_p4 = pnand %p1411_p3, %p1405_p0 }
 0x21f   :  { %1362 = vmatpush1.msk.msra.mxu0 %vm2228_vm14, %v745_v23  ;;  %v692_v24 = vsel %vm2235_vm13, %v687_v9, %v689_v12  ;;  %vm2236_vm14 = vmmov %vm2233_vm9 }
 0x220   :  { %v744_v11 = vpop.permute.xlu1 %743 }
 0x221   :  { %v634_v37 = vpop.permute.xlu0 %633  ;;  %v747_v40 = vsel %vm2229_vm4, %v742_v45, %v744_v11  ;;  %v753_v55 = vsel %vm2230_vm11, %v744_v11, %v738_v42  ;;  %vm2237_vm4 = vmmov %vm2233_vm9 }
 0x222   :  { %1377 = vmatprep.subr.msk.mxu1 %vm2231_vm1, %v753_v55  ;;  %vm2238_vm11 = vmmov %vm2235_vm13  ;;  %vm2241_vm1 = vnez %v2192_v60 }
 0x223   :  { %1378 = vmatpush1.msk.msra.mxu1 %vm2232_vm2, %v747_v40  ;;  %v699_v45 = vsel %vm2238_vm11, %v684_v59, %v687_v9  ;;  %vm2244_vm2 = vnez %v2188_v54 }
 0x224   :  { %v715_v57 = vpop.permute.xlu1 %714 }
 0x225   :  { %v639_v56 = vpop.permute.xlu0 %638  ;;  %v720_v29 = vsel %vm2233_vm9, %v713_v49, %v715_v57  ;;  %v721_v62 = vsel %vm2234_vm12, %v715_v57, %v717_v53  ;;  %vm2247_vm9 = vcmp.ge.s32.totalorder %v1599_v19, 1  ;;  %vm2248_vm12 = vnez %v2170_v26 }
 0x226   :  { %1363 = vmatprep.subr.msk.mxu0 %vm1621_vm8, %v721_v62 }
 0x227   :  { %1364 = vmatpush1.msk.msra.mxu0 %vm1608_vm6, %v720_v29  ;;  %vm2239_vm6 = vcmask 121856  }
 0x228   :  { %881 = vmatprep.subr.mxu0 %v1918_v20  ;;  %v719_v35 = vpop.permute.xlu1 %718  ;;  %v667_v27 = vsel %vm2239_vm6, %v662_v44, %v664_v51  ;;  %vm2240_vm8 = vmmov %vm2239_vm6 }
 0x229   :  { %v722_v39 = vsel %vm2236_vm14, %v717_v53, %v719_v35  ;;  %v728_v42 = vsel %vm2237_vm4, %v719_v35, %v713_v49  ;;  %882 = vmatpush1.msra.mxu0 %v1890_v6  ;;  %v606_v63 = vpop.permute.xlu0 %605  ;;  %v674_v30 = vsel %vm2240_vm8, %v659_v43, %v662_v44  ;;  %vm2249_vm13 = vmmov %vm2239_vm6  ;;  %vm2250_vm14 = vcmp.ge.s32.totalorder %v1597_v18, 1  ;;  %v812_v18 = vld [vmem:[%s2112_s3] sm:$0xff] }
 0x22a   :  { %1365 = vmatprep.subr.msk.mxu0 %vm1720_vm5, %v692_v24  ;;  %1379 = vmatprep.subr.msk.mxu1 %vm1614_vm7, %v728_v42  ;;  %vm2242_vm5 = vmmov %vm2238_vm11  ;;  %vm2243_vm7 = vcmask 130048   ;;  %v669_v60 = vsel %vm2249_vm13, %v1973_v47, %v659_v43  ;;  %vm2252_vm11 = vnez %v2190_v58  ;;  %vm2254_vm8 = vcmask 138240  }
 0x22b   :  { %1366 = vmatpush1.msk.msra.mxu0 %vm1690_vm0, %v699_v45  ;;  %1380 = vmatpush1.msk.msra.mxu1 %vm1647_vm10, %v722_v39  ;;  %v694_v28 = vsel %vm2242_vm5, %v1971_v41, %v684_v59  ;;  %v642_v6 = vsel %vm2243_vm7, %v1975_v52, %v639_v56  ;;  %vm2245_vm0 = vmmov %vm2242_vm5  ;;  %vm2256_vm5 = vnez %v2194_v61 }
 0x22c   :  { %1367 = vmatprep.subr.msk.mxu0 %vm2241_vm1, %v667_v27  ;;  %952 = vmatprep.subr.mxu1 %v1924_v22  ;;  %v641_v10 = vpop.permute.xlu1 %640  ;;  %v693_v46 = vsel %vm2245_vm0, %v689_v12, %v1971_v41  ;;  %vm2246_vm10 = vmmov %vm2243_vm7  ;;  %vm2259_vm0 = vnez %v2197_v15 }
 0x22d   :  { %1368 = vmatpush1.msk.msra.mxu0 %vm2244_vm2, %v674_v30  ;;  %953 = vmatpush1.msra.mxu1 %v1892_v7  ;;  %v649_v8 = vsel %vm2246_vm10, %v634_v37, %v1975_v52  ;;  %vm2251_vm4 = vmmov %vm2239_vm6  ;;  %v614_v7 = vpop.permute.xlu0 %613  ;;  %vm2258_vm2 = vcmp.ge.s32.totalorder %v1595_v17, 1  ;;  %vm2260_vm10 = vcmp.ge.s32.totalorder %v1593_v16, 1  ;;  %v1001_v16 = vld [vmem:[%s2114_s5] sm:$0xff] }
 0x22e   :  { %1369 = vmatprep.subr.msk.mxu0 %vm2247_vm9, %v642_v6  ;;  %1381 = vmatprep.subr.msk.mxu1 %vm2248_vm12, %v694_v28  ;;  %v668_v54 = vsel %vm2251_vm4, %v664_v51, %v1973_v47  ;;  %vm2253_vm6 = vmmov %vm2243_vm7  ;;  %vm2261_vm9 = vcmask 1043456   ;;  %vm2265_vm4 = vnez %v2200_v25 }
 0x22f   :  { %1370 = vmatpush1.msk.msra.mxu0 %vm2250_vm14, %v649_v8  ;;  %1382 = vmatpush1.msk.msra.mxu1 %vm1728_vm3, %v693_v46  ;;  %v644_v26 = vsel %vm2253_vm6, %v641_v10, %v634_v37  ;;  %vm2255_vm1 = vmmov %vm2254_vm8  ;;  %vm855_vm3 = vcmask 588800   ;;  %vm1008_vm14 = vcmask 31744  }
 0x230   :  { %1383 = vmatprep.subr.msk.mxu1 %vm2252_vm11, %v669_v60  ;;  %v612_v19 = vpop.permute.xlu1 %611  ;;  %vm2257_vm7 = vmmov %vm2253_vm6  ;;  %vm2266_vm11 = vnez %v2206_v33 }
 0x231   :  { %v617_v20 = vsel %vm2254_vm8, %v612_v19, %v614_v7  ;;  %v624_v22 = vsel %vm2255_vm1, %v606_v63, %v612_v19  ;;  %1384 = vmatpush1.msk.msra.mxu1 %vm2256_vm5, %v668_v54  ;;  %v643_v38 = vsel %vm2257_vm7, %v639_v56, %v641_v10  ;;  %vm2262_vm12 = vmmov %vm2255_vm1 }
 0x232   :  { %1371 = vmatprep.subr.msk.mxu0 %vm1864_vm15, %v617_v20  ;;  %1385 = vmatprep.subr.msk.mxu1 %vm2258_vm2, %v644_v26  ;;  %vm2263_vm13 = vmmov %vm2255_vm1  ;;  %vm1177_vm1 = vcmask 64512  }
 0x233   :  { %1372 = vmatpush1.msk.msra.mxu0 %vm2259_vm0, %v624_v22  ;;  %1386 = vmatpush1.msk.msra.mxu1 %vm2260_vm10, %v643_v38  ;;  %vm2264_vm15 = vmmov %vm2261_vm9 }
 0x234   :  { %1347 = vmatmul.mubr.msk.f32.vlgmr.msra.gmra.mxu0 %vm855_vm3, %v812_v18  ;;  %v616_v58 = vpop.permute.xlu1 %615  ;;  %1349 = vmatprep.subr.msk.mxu0 %vm2261_vm9, %v1509_v3  ;;  %vm2267_vm6 = vmmov %vm2261_vm9 }
 0x235   :  { %v618_v61 = vsel %vm2262_vm12, %v614_v7, %v616_v58  ;;  %v619_v32 = vsel %vm2263_vm13, %v616_v58, %v606_v63  ;;  %1350 = vmatpush1.msk.msra.mxu0 %vm2264_vm15, %v1495_v1  ;;  %1084 = vmatprep.mubr.f32.mxu0 %v1434_v4  ;;  %vm2268_vm8 = vmmov %vm2267_vm6 }
 0x236   :  { %1387 = vmatprep.subr.msk.mxu1 %vm2265_vm4, %v619_v32 }
 0x237   :  { %1388 = vmatpush1.msk.msra.mxu1 %vm2266_vm11, %v618_v61 }
 0x238   :  { %1348 = vmatmul.mubr.msk.f32.vlgmr.msra.gmra.mxu1 %vm855_vm3, %v812_v18  ;;  %1351 = vmatmul.mubr.msk.f32.vlgmr.msra.gmra.mxu0 %vm1008_vm14, %v1001_v16 }
 0x239   :  { %1352 = vmatprep.subr.msk.mxu1 %vm2267_vm6, %v1505_v2  ;;  %1155 = vmatprep.mubr.f32.mxu1 %v1434_v4 }
 0x23a   :  { %1353 = vmatpush1.msk.msra.mxu1 %vm2268_vm8, %v1490_v0  ;;  %1245 = vmatprep.mubr.f32.mxu0 %v1434_v4  ;;  %v853_v33 = vpop.permute.xlu0 %852 }
 0x23c   :  { %1354 = vmatmul.mubr.msk.f32.vlgmr.msra.gmra.mxu1 %vm1008_vm14, %v1001_v16 }
 0x23d   :  { %1316 = vmatprep.mubr.f32.mxu1 %v1434_v4 }
 0x23e   :  { %v1175_v34 = vpop.permute.xlu0 %1174 }
 0x241   :  { %v1006_v17 = vpop.permute.xlu1 %1005 }
 0x2f4   :  { %v925_v1 = vpop.f32.mrf.mxu0 }
 0x2f5   :  { %v926_v41 = vadd.f32 %v925_v1, %v853_v33 }
 0x2f6   :  { %v927_v3 = vpop.f32.mrf.mxu0 }
 0x2f7   :  { %v928_v47 = vadd.f32 %v927_v3, %v853_v33 }
 0x2f8   :  { %v996_v15 = vpop.f32.mrf.mxu1  ;;  %v1086_v25 = vpop.f32.mrf.mxu0 }
 0x2f9   :  { %v1087_v9 = vadd.f32 %v1086_v25, %v1006_v17  ;;  %v997_v5 = vadd.f32 %v996_v15, %v853_v33 }
 0x2fa   :  { %v998_v44 = vpop.f32.mrf.mxu1  ;;  %v1088_v2 = vpop.f32.mrf.mxu0 }
 0x2fb   :  { %v1089_v49 = vadd.f32 %v1088_v2, %v1006_v17  ;;  %v1162_v52 = vadd.f32 %v1087_v9, %v926_v41  ;;  %v999_v13 = vadd.f32 %v998_v44, %v853_v33 }
 0x2fc   :  { %v1157_v53 = vpop.f32.mrf.mxu1 }
 0x2fd   :  { %v1163_v0 = vadd.f32 %v1089_v49, %v928_v47  ;;  %v1158_v59 = vadd.f32 %v1157_v53, %v1006_v17  ;;  %v1166_v14 = vmax.f32 %v1162_v52, 0.0 }
 0x2fe   :  { %v1159_v12 = vpop.f32.mrf.mxu1 }
 0x2ff   :  { %v1167_v4 = vmax.f32 %v1163_v0, 0.0  ;;  %v1160_v50 = vadd.f32 %v1159_v12, %v1006_v17  ;;  %v1164_v43 = vadd.f32 %v1158_v59, %v997_v5 }
 0x301   :  { %v1165_v48 = vadd.f32 %v1160_v50, %v999_v13  ;;  %1211 = vmatprep.subr.mxu0 %v1167_v4  ;;  %v1168_v51 = vmax.f32 %v1164_v43, 0.0 }
 0x302   :  { %1212 = vmatpush1.msra.mxu0 %v1166_v14 }
 0x303   :  { %v1169_v31 = vmax.f32 %v1165_v48, 0.0  ;;  %1355 = vmatmul.mubr.msk.f32.vlgmr.msra.gmra.mxu0 %vm1177_vm1, %v1170_v21 }
 0x305   :  { %1282 = vmatprep.subr.mxu1 %v1169_v31 }
 0x306   :  { %1283 = vmatpush1.msra.mxu1 %v1168_v51 }
 0x307   :  { %1356 = vmatmul.mubr.msk.f32.vlgmr.msra.gmra.mxu1 %vm1177_vm1, %v1170_v21 }
 0x3c3   :  { %v1247_v23 = vpop.f32.mrf.mxu0 }
 0x3c4   :  { %v1248_v36 = vadd.f32 %v1247_v23, %v1175_v34 }
 0x3c5   :  { %v1249_v37 = vpop.f32.mrf.mxu0 }
 0x3c6   :  { %1323 = vst [vmem:[#allocation4] sm:$0xff] %v1248_v36  ;;  %v1250_v11 = vadd.f32 %v1249_v37, %v1175_v34 }
 0x3c7   :  { %v1318_v40 = vpop.f32.mrf.mxu1 }
 0x3c8   :  { %1324 = vst [vmem:[#allocation4 + $0x8] sm:$0xff] %v1250_v11  ;;  %v1319_v55 = vadd.f32 %v1318_v40, %v1175_v34 }
 0x3c9   :  { %v1320_v56 = vpop.f32.mrf.mxu1 }
 0x3ca   :  { %1325 = vst [vmem:[#allocation4 + $0x10] sm:$0xff] %v1319_v55  ;;  %v1321_v57 = vadd.f32 %v1320_v56, %v1175_v34 }
 0x3cc   :  { %1326 = vst [vmem:[#allocation4 + $0x18] sm:$0xff] %v1321_v57 }
 0x3cd   :  { %1415 = shalt.err (!%p1412_p4)
}
 0x3ce   :  { %1336 = dma.vmem_to_hbm [thread:$0]  %s1334_s30, 512, %s2118_s9, [#allocation5]  }
 0x3cf   :  { %1424 = dma.done.wait [#allocation5], 512  }
 0x3d0   :  { %1425 = vsyncadd [#allocation5], 4294966784 }
 0x3d1   :  { %1340 = vsyncpa [#allocation5], 1 }

</bundles_post_ra>
